<compile_context>
chip_gen: v7x
topology: tpu7x:2x2x1
jax: 0.10.0
libtpu: 0.0.40
codegen_flags: <defaults>
</compile_context>

<pallas_src>
import functools

import jax
import jax.numpy as jnp
from jax.experimental import pallas as pl
from jax.experimental.pallas import tpu as pltpu

D_RAM = 80
D_ACT = 8
D_IN = D_RAM + D_ACT          # 88
D_IN_PAD = 128                # lane-dense packed input width
D_H1 = 1024
D_H2 = 512
D_OUT = 79
D_OUT_PAD = 128               # lane-dense output width


def _cdiv(a, b):
    return (a + b - 1) // b


def _round_up(x, m):
    return _cdiv(x, m) * m


def predictor_kernel(x_ref, w1_ref, b1_ref, w2_ref, b2_ref, w3_ref, b3_ref,
                     o_ref):
    x = x_ref[...]                                             # (TB, 128) bf16

    # Layer 1: single fused dot (input packed + W1 zero-padded to 128 rows).
    h1 = jnp.dot(x, w1_ref[...], preferred_element_type=jnp.float32) + b1_ref[...]
    h1 = jnp.maximum(h1, 0.0).astype(jnp.bfloat16)             # (TB, 1024)

    # Layer 2.
    h2 = jnp.dot(h1, w2_ref[...], preferred_element_type=jnp.float32) + b2_ref[...]
    h2 = jnp.maximum(h2, 0.0).astype(jnp.bfloat16)             # (TB, 512)

    # Layer 3 (output padded to 128 lanes; ReLU on the head per the module).
    h3 = jnp.dot(h2, w3_ref[...], preferred_element_type=jnp.float32) + b3_ref[...]
    o_ref[...] = jnp.maximum(h3, 0.0).astype(o_ref.dtype)      # (TB, 128)


def prepare_params(params):
    """One-time weight prep: zero-pad W1 rows to 128 (matching the packed
    input) and the head to 128 output lanes; cast weights to bf16 (biases f32).
    Weights are (in_features, out_features), i.e. PyTorch weight.T."""
    w1, b1, w2, b2, w3, b3 = params
    w1p = jnp.pad(w1, ((0, D_IN_PAD - D_IN), (0, 0))).astype(jnp.bfloat16)     # (128, 1024)
    w3p = jnp.pad(w3, ((0, 0), (0, D_OUT_PAD - D_OUT))).astype(jnp.bfloat16)   # (512, 128)
    b3p = jnp.pad(b3, ((0, 0), (0, D_OUT_PAD - D_OUT))).astype(jnp.float32)
    return (w1p, b1.astype(jnp.float32),
            w2.astype(jnp.bfloat16), b2.astype(jnp.float32),
            w3p, b3p)


@functools.partial(jax.jit, static_argnames=("tb",))
def predictor_forward(ram, actions, prep_params, *, tb=512):
    """ram: (B, 80), actions: (B, 8) -> (B, 79) f32."""
    w1, b1, w2, b2, w3, b3 = prep_params
    B = ram.shape[0]

    # Tile selection: at most `tb` rows per tile, at least 2 tiles when B is
    # large enough (so the "parallel" axis can shard across v7x's 2 TCs), and
    # tb_eff chosen to minimize zero-row padding (pad <= ~8 rows per tile).
    n_tiles = max(_cdiv(B, tb), 1)
    if B >= 16 and n_tiles < 2:
        n_tiles = 2
    tb_eff = _round_up(_cdiv(B, n_tiles), 8)
    Bp = _round_up(B, tb_eff)

    # Pack ram+actions into one lane-dense (Bp, 128) bf16 slab:
    # cols 0:80 = ram, 80:88 = actions, 88:128 = zeros (match W1 zero rows).
    x = jnp.concatenate(
        [ram.astype(jnp.bfloat16), actions.astype(jnp.bfloat16)], axis=1)
    x = jnp.pad(x, ((0, Bp - B), (0, D_IN_PAD - D_IN)))

    grid = (Bp // tb_eff,)

    def batch_spec(feat):
        return pl.BlockSpec((tb_eff, feat), lambda i: (i, 0))

    def resident_spec(arr):
        # Full-array block, constant index_map -> DMA'd once, stays in VMEM.
        return pl.BlockSpec(arr.shape, lambda i: (0, 0))

    # TODO(synk): if tb is raised to >=1024 on v5e, pass
    # pltpu.CompilerParams(vmem_limit_bytes=...) to lift the 16 MiB default
    # scoped-VMEM limit; not needed at the default tb=512 (<6 MB footprint).
    out_padded = pl.pallas_call(
        predictor_kernel,
        out_shape=jax.ShapeDtypeStruct((Bp, D_OUT_PAD), jnp.float32),
        grid=grid,
        in_specs=[
            batch_spec(D_IN_PAD),                      # packed input tile
            resident_spec(w1), resident_spec(b1),
            resident_spec(w2), resident_spec(b2),
            resident_spec(w3), resident_spec(b3),
        ],
        out_specs=batch_spec(D_OUT_PAD),
        compiler_params=pltpu.CompilerParams(
            dimension_semantics=("parallel",)),
    )(x, w1, b1, w2, b2, w3, b3)

    return out_padded[:B, :D_OUT]


def init_params(key):
    """nn.Linear-style init: U(-1/sqrt(fan_in), +1/sqrt(fan_in)).
    Weights stored as (in_features, out_features), i.e. PyTorch weight.T."""
    dims = [(D_IN, D_H1), (D_H1, D_H2), (D_H2, D_OUT)]
    params = []
    for fan_in, fan_out in dims:
        kw, kb, key = jax.random.split(key, 3)
        bound = 1.0 / jnp.sqrt(jnp.float32(fan_in))
        w = jax.random.uniform(kw, (fan_in, fan_out), jnp.float32, -bound, bound)
        b = jax.random.uniform(kb, (1, fan_out), jnp.float32, -bound, bound)
        params += [w, b]
    return tuple(params)


if __name__ == "__main__":
    key = jax.random.PRNGKey(0)
    k_in, k_act, k_param = jax.random.split(key, 3)

    B = 2
    ram = jax.random.normal(k_in, (B, D_RAM), jnp.float32)        # "RAM" obs (80)
    actions = jax.random.normal(k_act, (B, D_ACT), jnp.float32)   # actions (8)

    params = init_params(k_param)
    prep = prepare_params(params)

    out = predictor_forward(ram, actions, prep)
    out = jax.block_until_ready(out)

    # Reference in plain JAX using the same bf16-weight / f32-accum math.
    w1, b1, w2, b2, w3, b3 = params
    xr = jnp.concatenate([ram, actions], axis=1)
    r = jnp.dot(xr.astype(jnp.bfloat16), w1.astype(jnp.bfloat16),
                preferred_element_type=jnp.float32) + b1
    r = jnp.maximum(r, 0.0)
    r = jnp.dot(r.astype(jnp.bfloat16), w2.astype(jnp.bfloat16),
                preferred_element_type=jnp.float32) + b2
    r = jnp.maximum(r, 0.0)
    r = jnp.dot(r.astype(jnp.bfloat16), w3.astype(jnp.bfloat16),
                preferred_element_type=jnp.float32) + b3
    ref = jnp.maximum(r, 0.0)

    assert out.shape == (B, D_OUT), out.shape
    assert bool(jnp.all(jnp.isfinite(out))), "non-finite output"
    assert jnp.allclose(out, ref, atol=1e-2, rtol=1e-2), "mismatch vs reference"

    print("KERNEL_OK")
</pallas_src>

<mosaic_0001>
module attributes {stable_mosaic.version = 11 : i64} {
  func.func @predictor_kernel(%arg0: i32, %arg1: memref<8x128xbf16, #tpu.memory_space<vmem>>, %arg2: memref<128x1024xbf16, #tpu.memory_space<vmem>>, %arg3: memref<1x1024xf32, #tpu.memory_space<vmem>>, %arg4: memref<1024x512xbf16, #tpu.memory_space<vmem>>, %arg5: memref<1x512xf32, #tpu.memory_space<vmem>>, %arg6: memref<512x128xbf16, #tpu.memory_space<vmem>>, %arg7: memref<1x128xf32, #tpu.memory_space<vmem>>, %arg8: memref<8x128xf32, #tpu.memory_space<vmem>>) attributes {dimension_semantics = [#tpu.dimension_semantics<parallel>], iteration_bounds = array<i64: 1>, scalar_prefetch = 0 : i64, scratch_operands = 0 : i64, tpu.core_type = #tpu.core_type<tc>, window_params = [{transform_indices = @transform_0, window_bounds = array<i64: 8, 128>}, {pipeline_mode = #tpu.pipeline_mode<synchronous>, transform_indices = @transform_1, window_bounds = array<i64: 128, 1024>}, {pipeline_mode = #tpu.pipeline_mode<synchronous>, transform_indices = @transform_2, window_bounds = array<i64: 1, 1024>}, {pipeline_mode = #tpu.pipeline_mode<synchronous>, transform_indices = @transform_3, window_bounds = array<i64: 1024, 512>}, {pipeline_mode = #tpu.pipeline_mode<synchronous>, transform_indices = @transform_4, window_bounds = array<i64: 1, 512>}, {pipeline_mode = #tpu.pipeline_mode<synchronous>, transform_indices = @transform_5, window_bounds = array<i64: 512, 128>}, {pipeline_mode = #tpu.pipeline_mode<synchronous>, transform_indices = @transform_6, window_bounds = array<i64: 1, 128>}, {transform_indices = @transform_7, window_bounds = array<i64: 8, 128>}]} {
    %c0 = arith.constant 0 : index
    %c0_0 = arith.constant 0 : index
    %0 = vector.load %arg1[%c0, %c0_0] : memref<8x128xbf16, #tpu.memory_space<vmem>>, vector<8x128xbf16>
    %c0_1 = arith.constant 0 : index
    %c0_2 = arith.constant 0 : index
    %1 = vector.load %arg2[%c0_1, %c0_2] : memref<128x1024xbf16, #tpu.memory_space<vmem>>, vector<128x1024xbf16>
    %cst = arith.constant dense<0.000000e+00> : vector<8x1024xf32>
    %2 = tpu.matmul %0, %1, %cst {dimension_numbers = #tpu.dot_dimension_numbers<[1], [0], [0], [1], [0, 0, 1, 1], [], []>} : vector<8x128xbf16>, vector<128x1024xbf16>, vector<8x1024xf32> -> vector<8x1024xf32>
    %c0_3 = arith.constant 0 : index
    %c0_4 = arith.constant 0 : index
    %3 = vector.load %arg3[%c0_3, %c0_4] : memref<1x1024xf32, #tpu.memory_space<vmem>>, vector<1x1024xf32>
    %4 = vector.broadcast %3 : vector<1x1024xf32> to vector<8x1024xf32>
    %5 = arith.addf %2, %4 : vector<8x1024xf32>
    %cst_5 = arith.constant 0.000000e+00 : f32
    %6 = vector.broadcast %cst_5 : f32 to vector<8x1024xf32>
    %7 = arith.maximumf %5, %6 : vector<8x1024xf32>
    %8 = arith.truncf %7 : vector<8x1024xf32> to vector<8x1024xbf16>
    %c0_6 = arith.constant 0 : index
    %c0_7 = arith.constant 0 : index
    %9 = vector.load %arg4[%c0_6, %c0_7] : memref<1024x512xbf16, #tpu.memory_space<vmem>>, vector<1024x512xbf16>
    %cst_8 = arith.constant dense<0.000000e+00> : vector<8x512xf32>
    %10 = tpu.matmul %8, %9, %cst_8 {dimension_numbers = #tpu.dot_dimension_numbers<[1], [0], [0], [1], [0, 0, 1, 1], [], []>} : vector<8x1024xbf16>, vector<1024x512xbf16>, vector<8x512xf32> -> vector<8x512xf32>
    %c0_9 = arith.constant 0 : index
    %c0_10 = arith.constant 0 : index
    %11 = vector.load %arg5[%c0_9, %c0_10] : memref<1x512xf32, #tpu.memory_space<vmem>>, vector<1x512xf32>
    %12 = vector.broadcast %11 : vector<1x512xf32> to vector<8x512xf32>
    %13 = arith.addf %10, %12 : vector<8x512xf32>
    %cst_11 = arith.constant 0.000000e+00 : f32
    %14 = vector.broadcast %cst_11 : f32 to vector<8x512xf32>
    %15 = arith.maximumf %13, %14 : vector<8x512xf32>
    %16 = arith.truncf %15 : vector<8x512xf32> to vector<8x512xbf16>
    %c0_12 = arith.constant 0 : index
    %c0_13 = arith.constant 0 : index
    %17 = vector.load %arg6[%c0_12, %c0_13] : memref<512x128xbf16, #tpu.memory_space<vmem>>, vector<512x128xbf16>
    %cst_14 = arith.constant dense<0.000000e+00> : vector<8x128xf32>
    %18 = tpu.matmul %16, %17, %cst_14 {dimension_numbers = #tpu.dot_dimension_numbers<[1], [0], [0], [1], [0, 0, 1, 1], [], []>} : vector<8x512xbf16>, vector<512x128xbf16>, vector<8x128xf32> -> vector<8x128xf32>
    %c0_15 = arith.constant 0 : index
    %c0_16 = arith.constant 0 : index
    %19 = vector.load %arg7[%c0_15, %c0_16] : memref<1x128xf32, #tpu.memory_space<vmem>>, vector<1x128xf32>
    %20 = vector.broadcast %19 : vector<1x128xf32> to vector<8x128xf32>
    %21 = arith.addf %18, %20 : vector<8x128xf32>
    %cst_17 = arith.constant 0.000000e+00 : f32
    %22 = vector.broadcast %cst_17 : f32 to vector<8x128xf32>
    %23 = arith.maximumf %21, %22 : vector<8x128xf32>
    %c0_18 = arith.constant 0 : index
    %c0_19 = arith.constant 0 : index
    %24 = vector.load %arg8[%c0_18, %c0_19] : memref<8x128xf32, #tpu.memory_space<vmem>>, vector<8x128xf32>
    tpu.vector_store %arg8[%c0_18, %c0_19], %23 {strides = array<i32>} : memref<8x128xf32, #tpu.memory_space<vmem>>, vector<8x128xf32>,
    return
  }
  func.func @transform_0(%arg0: i32) -> (i32, i32) {
    %c0_i32 = arith.constant 0 : i32
    %c0_i32_0 = arith.constant 0 : i32
    return %arg0, %c0_i32 : i32, i32
  }
  func.func @transform_1(%arg0: i32) -> (i32, i32) {
    %c0_i32 = arith.constant 0 : i32
    %c0_i32_0 = arith.constant 0 : i32
    %c0_i32_1 = arith.constant 0 : i32
    return %c0_i32, %c0_i32_0 : i32, i32
  }
  func.func @transform_2(%arg0: i32) -> (i32, i32) {
    %c0_i32 = arith.constant 0 : i32
    %c0_i32_0 = arith.constant 0 : i32
    %c0_i32_1 = arith.constant 0 : i32
    return %c0_i32, %c0_i32_0 : i32, i32
  }
  func.func @transform_3(%arg0: i32) -> (i32, i32) {
    %c0_i32 = arith.constant 0 : i32
    %c0_i32_0 = arith.constant 0 : i32
    %c0_i32_1 = arith.constant 0 : i32
    return %c0_i32, %c0_i32_0 : i32, i32
  }
  func.func @transform_4(%arg0: i32) -> (i32, i32) {
    %c0_i32 = arith.constant 0 : i32
    %c0_i32_0 = arith.constant 0 : i32
    %c0_i32_1 = arith.constant 0 : i32
    return %c0_i32, %c0_i32_0 : i32, i32
  }
  func.func @transform_5(%arg0: i32) -> (i32, i32) {
    %c0_i32 = arith.constant 0 : i32
    %c0_i32_0 = arith.constant 0 : i32
    %c0_i32_1 = arith.constant 0 : i32
    return %c0_i32, %c0_i32_0 : i32, i32
  }
  func.func @transform_6(%arg0: i32) -> (i32, i32) {
    %c0_i32 = arith.constant 0 : i32
    %c0_i32_0 = arith.constant 0 : i32
    %c0_i32_1 = arith.constant 0 : i32
    return %c0_i32, %c0_i32_0 : i32, i32
  }
  func.func @transform_7(%arg0: i32) -> (i32, i32) {
    %c0_i32 = arith.constant 0 : i32
    %c0_i32_0 = arith.constant 0 : i32
    return %arg0, %c0_i32 : i32, i32
  }
}

</mosaic_0001>

<bundles_post_ra>
// kernel: predictor_forward.1
= control target key start
LH: loop header
LB: loop body
LE: loop exit
PB: predicated region body
PF: predicated region fallthrough
CT: control target
= control target key end

     0   :  { %12 = vsyncpa [#allocation3], 0  ;;  %s4003_s0 = inlined_call_operand.vmem [shape: bf16[8,128], index: 0, kind: input, shape index: {}]   ;;  %s4004_s1 = inlined_call_operand.hbm [shape: bf16[128,1024], index: 1, kind: input, shape index: {}]   ;;  %s4005_s2 = inlined_call_operand.vmem [shape: f32[1,1024], index: 2, kind: input, shape index: {}]   ;;  %s4006_s3 = inlined_call_operand.hbm [shape: bf16[1024,512], index: 3, kind: input, shape index: {}]   ;;  %s4007_s4 = inlined_call_operand.vmem [shape: f32[1,512], index: 4, kind: input, shape index: {}]   ;;  %s4008_s5 = inlined_call_operand.hbm [shape: bf16[512,128], index: 5, kind: input, shape index: {}]   ;;  %s4009_s6 = inlined_call_operand.vmem [shape: f32[1,128], index: 6, kind: input, shape index: {}]   ;;  %s4010_s7 = inlined_call_operand.vmem [shape: f32[8,128], index: 7, kind: output, shape index: {}]  }
   0x1   :  { %13 = vsyncpa [#allocation5], 0  ;;  %s3841_s24 = smov [#allocation4]   ;;  %s3771_s28 = scalar_lea.hbm %s4006_s3, 32768 }
   0x2   :  { %s35_s25 = sshll.u32 %s3841_s24, 4  ;;  %p3772_p0 = scmp.ne.s32.totalorder %s4006_s3, %s3771_s28  ;;  %s36_s25 = int_to_ptr.vmem [resolvable:$true] %s35_s25 }
   0x3   :  { %p3775_p1 = scmp.lt.u32.totalorder %s3771_s28, %s4006_s3 }
   0x5   :  { %p3777_p2 = pnand %p3775_p1, %p3772_p0 }
   0x7   :  { %3780 = shalt.err (!%p3777_p2)
}
   0x8   :  { %s3781_s10 = scalar_lea.vmem %s36_s25, 32768  ;;  %p3786_p4 = scmp.lt.s32.totalorder %s36_s25, %s36_s25 }
   0x9   :  { %p3782_p3 = scmp.ne.s32.totalorder %s36_s25, %s3781_s10  ;;  %p3787_p5 = scmp.lt.s32.totalorder %s3781_s10, %s3781_s10 }
   0xb   :  { %p3788_p6 = por %p3787_p5, %p3786_p4 }
   0xd   :  { %p3789_p7 = pnand %p3788_p6, %p3782_p3 }
   0xf   :  { %3792 = shalt.err (!%p3789_p7)
}
  0x10   :  { %s3842_s11 = smov 256   ;;  %s3843_s12 = smov 16  }
  0x11   :  { %41 = dma.hbm_to_vmem [thread:$0]  %s4006_s3, 32768, %s36_s25, [#allocation5], %s3842_s11, %s3842_s11, %s3843_s12  }
  0x12   :  { %s3844_s15 = smov [#allocation2]   ;;  %s3793_s19 = scalar_lea.hbm %s4004_s1, 8192 }
  0x13   :  { %s21_s16 = sshll.u32 %s3844_s15, 4  ;;  %p3794_p8 = scmp.ne.s32.totalorder %s4004_s1, %s3793_s19  ;;  %s22_s16 = int_to_ptr.vmem [resolvable:$true] %s21_s16 }
  0x14   :  { %p3797_p9 = scmp.lt.u32.totalorder %s3793_s19, %s4004_s1 }
  0x16   :  { %p3799_p10 = pnand %p3797_p9, %p3794_p8 }
  0x18   :  { %3802 = shalt.err (!%p3799_p10)
}
  0x19   :  { %s3803_s24 = scalar_lea.vmem %s22_s16, 8192  ;;  %p3808_p12 = scmp.lt.s32.totalorder %s22_s16, %s22_s16 }
  0x1a   :  { %p3804_p11 = scmp.ne.s32.totalorder %s22_s16, %s3803_s24  ;;  %p3809_p13 = scmp.lt.s32.totalorder %s3803_s24, %s3803_s24 }
  0x1c   :  { %p3810_p0 = por %p3809_p13, %p3808_p12 }
  0x1e   :  { %p3811_p1 = pnand %p3810_p0, %p3804_p11 }
  0x20   :  { %3814 = shalt.err (!%p3811_p1)
}
  0x21   :  { %s3845_s3 = smov 512   ;;  %s3846_s25 = smov 32  }
  0x22   :  { %27 = dma.hbm_to_vmem [thread:$0]  %s4004_s1, 8192, %s22_s16, [#allocation3], %s3845_s3, %s3845_s3, %s3846_s25  }
  0x23   :  { %s3847_s28 = smov [#allocation6]   ;;  %s3815_s9 = scalar_lea.hbm %s4008_s5, 4096 }
  0x24   :  { %s49_s29 = sshll.u32 %s3847_s28, 4  ;;  %p3816_p2 = scmp.ne.s32.totalorder %s4008_s5, %s3815_s9  ;;  %s50_s29 = int_to_ptr.vmem [resolvable:$true] %s49_s29 }
  0x25   :  { %p3819_p3 = scmp.lt.u32.totalorder %s3815_s9, %s4008_s5 }
  0x27   :  { %p3821_p4 = pnand %p3819_p3, %p3816_p2 }
  0x29   :  { %3824 = shalt.err (!%p3821_p4)
}
  0x2a   :  { %s3825_s14 = scalar_lea.vmem %s50_s29, 4096  ;;  %p3830_p6 = scmp.lt.s32.totalorder %s50_s29, %s50_s29 }
  0x2b   :  { %p3826_p5 = scmp.ne.s32.totalorder %s50_s29, %s3825_s14  ;;  %p3831_p7 = scmp.lt.s32.totalorder %s3825_s14, %s3825_s14 }
  0x2d   :  { %p3832_p8 = por %p3831_p7, %p3830_p6 }
  0x2f   :  { %p3833_p9 = pnand %p3832_p8, %p3826_p5 }
  0x31   :  { %3836 = shalt.err (!%p3833_p9)
}
  0x32   :  { %s3848_s1 = smov 64   ;;  %s3849_s15 = smov 4  }
  0x33   :  { %55 = dma.hbm_to_vmem [thread:$0]  %s4008_s5, 4096, %s50_s29, [#allocation5], %s3848_s1, %s3848_s1, %s3849_s15  }
  0x34   :  { %3837 = dma.done.wait [#allocation3], 8192  }
  0x35   :  { %3838 = vsyncadd [#allocation3], 4294959104 }
  0x36   :  { %3839 = dma.done.wait [#allocation5], 36864  }
  0x37   :  { %3840 = vsyncadd [#allocation5], 4294930432  ;;  %v3850_v0 = vmov 0   ;;  %v69_v1 = vld [vmem:[#allocation2] sm:$0xff]  ;;  %v70_v14 = vld [vmem:[#allocation2 + $0x8] sm:$0xff] }
  0x38   :  { %527 = vmatprep.mubr.bf16.mxu0 %v3850_v0  ;;  %568 = vmatprep.mubr.bf16.mxu1 %v3850_v0  ;;  %v73_v2 = vld [vmem:[#allocation2 + $0x20] sm:$0xff]  ;;  %v74_v15 = vld [vmem:[#allocation2 + $0x28] sm:$0xff]  ;;  %v71_v58 = vld [vmem:[#allocation2 + $0x10] sm:$0xff] }
  0x39   :  { %v77_v3 = vld [vmem:[#allocation2 + $0x40] sm:$0xff]  ;;  %v2921_v4 = vcombine.high %v69_v1, %v73_v2  ;;  %v2920_v5 = vcombine.low %v69_v1, %v73_v2  ;;  %v78_v16 = vld [vmem:[#allocation2 + $0x48] sm:$0xff]  ;;  %v2923_v18 = vcombine.high %v70_v14, %v74_v15  ;;  %v2922_v19 = vcombine.low %v70_v14, %v74_v15  ;;  %v75_v59 = vld [vmem:[#allocation2 + $0x30] sm:$0xff] }
  0x3a   :  { %v81_v6 = vld [vmem:[#allocation2 + $0x60] sm:$0xff]  ;;  %v82_v17 = vld [vmem:[#allocation2 + $0x68] sm:$0xff]  ;;  %v2925_v1 = vcombine.high %v71_v58, %v75_v59  ;;  %v3932_v2 = vld [vmem:[%s4003_s0] sm:$0xf] }
  0x3b   :  { %v2929_v7 = vcombine.high %v77_v3, %v81_v6  ;;  %v85_v8 = vld [vmem:[#allocation2 + $0x80] sm:$0xff]  ;;  %495 = vmatprep.subr.bf16.mxu0 %v2921_v4  ;;  %v2928_v10 = vcombine.low %v77_v3, %v81_v6  ;;  %v2931_v20 = vcombine.high %v78_v16, %v82_v17  ;;  %v86_v22 = vld [vmem:[#allocation2 + $0x88] sm:$0xff]  ;;  %536 = vmatprep.subr.bf16.mxu1 %v2923_v18  ;;  %v79_v4 = vld [vmem:[#allocation2 + $0x50] sm:$0xff] }
  0x3c   :  { %v89_v9 = vld [vmem:[#allocation2 + $0xa0] sm:$0xff]  ;;  %496 = vmatpush1.bf16.msra.mxu0 %v2920_v5  ;;  %v90_v23 = vld [vmem:[#allocation2 + $0xa8] sm:$0xff]  ;;  %537 = vmatpush1.bf16.msra.mxu1 %v2922_v19  ;;  %v2930_v27 = vcombine.low %v78_v16, %v82_v17  ;;  %v83_v5 = vld [vmem:[#allocation2 + $0x70] sm:$0xff] }
  0x3d   :  { %497 = vmatprep.subr.bf16.mxu0 %v2929_v7  ;;  %v2937_v11 = vcombine.high %v85_v8, %v89_v9  ;;  %v93_v12 = vld [vmem:[#allocation2 + $0xc0] sm:$0xff]  ;;  %v2936_v21 = vcombine.low %v85_v8, %v89_v9  ;;  %538 = vmatprep.subr.bf16.mxu1 %v2931_v20  ;;  %v2939_v28 = vcombine.high %v86_v22, %v90_v23  ;;  %v94_v30 = vld [vmem:[#allocation2 + $0xc8] sm:$0xff]  ;;  %v72_v7 = vld [vmem:[#allocation2 + $0x18] sm:$0xff] }
  0x3e   :  { %v97_v13 = vld [vmem:[#allocation2 + $0xe0] sm:$0xff]  ;;  %v98_v31 = vld [vmem:[#allocation2 + $0xe8] sm:$0xff]  ;;  %v2938_v35 = vcombine.low %v86_v22, %v90_v23  ;;  %v2924_v8 = vcombine.low %v71_v58, %v75_v59  ;;  %v76_v9 = vld [vmem:[#allocation2 + $0x38] sm:$0xff]  ;;  %v2932_v16 = vcombine.low %v79_v4, %v83_v5 }
  0x3f   :  { %v2945_v24 = vcombine.high %v93_v12, %v97_v13  ;;  %v101_v25 = vld [vmem:[#allocation2 + $0x100] sm:$0xff]  ;;  %v2944_v29 = vcombine.low %v93_v12, %v97_v13  ;;  %v2947_v36 = vcombine.high %v94_v30, %v98_v31  ;;  %v102_v38 = vld [vmem:[#allocation2 + $0x108] sm:$0xff]  ;;  %v2946_v43 = vcombine.low %v94_v30, %v98_v31  ;;  %v87_v12 = vld [vmem:[#allocation2 + $0x90] sm:$0xff] }
  0x40   :  { %498 = vmatpush1.bf16.msra.mxu0 %v2928_v10  ;;  %v105_v26 = vld [vmem:[#allocation2 + $0x120] sm:$0xff]  ;;  %539 = vmatpush1.bf16.msra.mxu1 %v2930_v27  ;;  %v106_v39 = vld [vmem:[#allocation2 + $0x128] sm:$0xff]  ;;  %v2933_v10 = vcombine.high %v79_v4, %v83_v5  ;;  %v91_v13 = vld [vmem:[#allocation2 + $0xb0] sm:$0xff]  ;;  %v2927_v14 = vcombine.high %v72_v7, %v76_v9 }
  0x41   :  { %499 = vmatprep.subr.bf16.mxu0 %v2937_v11  ;;  %v2953_v32 = vcombine.high %v101_v25, %v105_v26  ;;  %v109_v33 = vld [vmem:[#allocation2 + $0x140] sm:$0xff]  ;;  %540 = vmatprep.subr.bf16.mxu1 %v2939_v28  ;;  %v2952_v37 = vcombine.low %v101_v25, %v105_v26  ;;  %v2955_v44 = vcombine.high %v102_v38, %v106_v39  ;;  %v110_v46 = vld [vmem:[#allocation2 + $0x148] sm:$0xff]  ;;  %v80_v15 = vld [vmem:[#allocation2 + $0x58] sm:$0xff] }
  0x42   :  { %v113_v34 = vld [vmem:[#allocation2 + $0x160] sm:$0xff]  ;;  %v114_v47 = vld [vmem:[#allocation2 + $0x168] sm:$0xff]  ;;  %v2954_v51 = vcombine.low %v102_v38, %v106_v39  ;;  %v84_v17 = vld [vmem:[#allocation2 + $0x78] sm:$0xff]  ;;  %v2941_v18 = vcombine.high %v87_v12, %v91_v13 }
  0x43   :  { %v2961_v40 = vcombine.high %v109_v33, %v113_v34  ;;  %v117_v41 = vld [vmem:[#allocation2 + $0x180] sm:$0xff]  ;;  %v2960_v45 = vcombine.low %v109_v33, %v113_v34  ;;  %v2963_v52 = vcombine.high %v110_v46, %v114_v47  ;;  %v118_v53 = vld [vmem:[#allocation2 + $0x188] sm:$0xff]  ;;  %v2962_v57 = vcombine.low %v110_v46, %v114_v47  ;;  %v95_v19 = vld [vmem:[#allocation2 + $0xd0] sm:$0xff] }
  0x44   :  { %500 = vmatpush1.bf16.msra.mxu0 %v2936_v21  ;;  %v121_v42 = vld [vmem:[#allocation2 + $0x1a0] sm:$0xff]  ;;  %541 = vmatpush1.bf16.msra.mxu1 %v2938_v35  ;;  %v122_v55 = vld [vmem:[#allocation2 + $0x1a8] sm:$0xff]  ;;  %v99_v20 = vld [vmem:[#allocation2 + $0xf0] sm:$0xff]  ;;  %v2926_v21 = vcombine.low %v72_v7, %v76_v9  ;;  %v2935_v22 = vcombine.high %v80_v15, %v84_v17 }
  0x45   :  { %501 = vmatprep.subr.bf16.mxu0 %v2945_v24  ;;  %542 = vmatprep.subr.bf16.mxu1 %v2947_v36  ;;  %v2969_v48 = vcombine.high %v117_v41, %v121_v42  ;;  %v125_v49 = vld [vmem:[#allocation2 + $0x1c0] sm:$0xff]  ;;  %v2968_v54 = vcombine.low %v117_v41, %v121_v42  ;;  %v2971_v60 = vcombine.high %v118_v53, %v122_v55  ;;  %v126_v61 = vld [vmem:[#allocation2 + $0x1c8] sm:$0xff]  ;;  %v88_v23 = vld [vmem:[#allocation2 + $0x98] sm:$0xff] }
  0x46   :  { %v129_v50 = vld [vmem:[#allocation2 + $0x1e0] sm:$0xff]  ;;  %v130_v63 = vld [vmem:[#allocation2 + $0x1e8] sm:$0xff]  ;;  %v2970_v3 = vcombine.low %v118_v53, %v122_v55  ;;  %v2940_v24 = vcombine.low %v87_v12, %v91_v13  ;;  %v92_v25 = vld [vmem:[#allocation2 + $0xb8] sm:$0xff]  ;;  %v2949_v26 = vcombine.high %v95_v19, %v99_v20 }
  0x47   :  { %v2977_v56 = vcombine.high %v125_v49, %v129_v50  ;;  %v2976_v62 = vcombine.low %v125_v49, %v129_v50  ;;  %v2979_v6 = vcombine.high %v126_v61, %v130_v63  ;;  %v2978_v11 = vcombine.low %v126_v61, %v130_v63  ;;  %v103_v27 = vld [vmem:[#allocation2 + $0x110] sm:$0xff]  ;;  %v96_v31 = vld [vmem:[#allocation2 + $0xd8] sm:$0xff] }
  0x48   :  { %502 = vmatpush1.bf16.msra.mxu0 %v2944_v29  ;;  %543 = vmatpush1.bf16.msra.mxu1 %v2946_v43  ;;  %v107_v28 = vld [vmem:[#allocation2 + $0x130] sm:$0xff]  ;;  %v2934_v29 = vcombine.low %v80_v15, %v84_v17  ;;  %v2943_v30 = vcombine.high %v88_v23, %v92_v25  ;;  %v100_v33 = vld [vmem:[#allocation2 + $0xf8] sm:$0xff] }
  0x49   :  { %503 = vmatprep.subr.bf16.mxu0 %v2953_v32  ;;  %544 = vmatprep.subr.bf16.mxu1 %v2955_v44  ;;  %v2948_v32 = vcombine.low %v95_v19, %v99_v20  ;;  %v2957_v34 = vcombine.high %v103_v27, %v107_v28  ;;  %v111_v35 = vld [vmem:[#allocation2 + $0x150] sm:$0xff]  ;;  %v2951_v38 = vcombine.high %v96_v31, %v100_v33  ;;  %v104_v39 = vld [vmem:[#allocation2 + $0x118] sm:$0xff] }
  0x4a   :  { %v115_v36 = vld [vmem:[#allocation2 + $0x170] sm:$0xff]  ;;  %v108_v41 = vld [vmem:[#allocation2 + $0x138] sm:$0xff]  ;;  %v2950_v44 = vcombine.low %v96_v31, %v100_v33 }
  0x4b   :  { %v119_v42 = vld [vmem:[#allocation2 + $0x190] sm:$0xff]  ;;  %v112_v46 = vld [vmem:[#allocation2 + $0x158] sm:$0xff]  ;;  %v2964_v47 = vcombine.low %v111_v35, %v115_v36 }
  0x4c   :  { %504 = vmatpush1.bf16.msra.mxu0 %v2952_v37  ;;  %545 = vmatpush1.bf16.msra.mxu1 %v2954_v51  ;;  %v2942_v37 = vcombine.low %v88_v23, %v92_v25  ;;  %v123_v43 = vld [vmem:[#allocation2 + $0x1b0] sm:$0xff]  ;;  %v128_v59 = vld [vmem:[#allocation2 + $0x1d8] sm:$0xff] }
  0x4d   :  { %505 = vmatprep.subr.bf16.mxu0 %v2961_v40  ;;  %546 = vmatprep.subr.bf16.mxu1 %v2963_v52  ;;  %v2956_v40 = vcombine.low %v103_v27, %v107_v28  ;;  %v2973_v49 = vcombine.high %v119_v42, %v123_v43  ;;  %v127_v50 = vld [vmem:[#allocation2 + $0x1d0] sm:$0xff]  ;;  %v2958_v52 = vcombine.low %v104_v39, %v108_v41  ;;  %v3372_v15 = vld [vmem:[#allocation4 + $0x4c] ss:$16 sps:$4 sm:$0xff]   ;;  %v3382_v25 = vld [vmem:[#allocation4 + $0x88] ss:$16 sps:$4 sm:$0xff]  }
  0x4e   :  { %v131_v51 = vld [vmem:[#allocation2 + $0x1f0] sm:$0xff]  ;;  %v2972_v55 = vcombine.low %v119_v42, %v123_v43  ;;  %v3378_v19 = vld [vmem:[#allocation4 + $0x6c] ss:$16 sps:$4 sm:$0xff]   ;;  %v3394_v33 = vld [vmem:[#allocation4 + $0xc8] ss:$16 sps:$4 sm:$0xff]  }
  0x4f   :  { %v2980_v63 = vcombine.low %v127_v50, %v131_v51  ;;  %v3363_v5 = vld [vmem:[#allocation4 + $0x24] ss:$16 sps:$4 sm:$0xff]   ;;  %v3367_v12 = vld [vmem:[#allocation4 + $0x40] ss:$16 sps:$4 sm:$0xff]   ;;  %v3384_v23 = vld [vmem:[#allocation4 + $0x8c] ss:$16 sps:$4 sm:$0xff]  }
  0x50   :  { %506 = vmatpush1.bf16.msra.mxu0 %v2960_v45  ;;  %547 = vmatpush1.bf16.msra.mxu1 %v2962_v57  ;;  %v2959_v45 = vcombine.high %v104_v39, %v108_v41  ;;  %v2981_v57 = vcombine.high %v127_v50, %v131_v51  ;;  %v3369_v9 = vld [vmem:[#allocation4 + $0x44] ss:$16 sps:$4 sm:$0xff]   ;;  %v3379_v20 = vld [vmem:[#allocation4 + $0x80] ss:$16 sps:$4 sm:$0xff]   ;;  %v3406_v41 = vld [vmem:[#allocation4 + $0x108] ss:$16 sps:$4 sm:$0xff]  }
  0x51   :  { %507 = vmatprep.subr.bf16.mxu0 %v2969_v48  ;;  %548 = vmatprep.subr.bf16.mxu1 %v2971_v60  ;;  %v116_v48 = vld [vmem:[#allocation2 + $0x178] sm:$0xff]  ;;  %v3375_v13 = vld [vmem:[#allocation4 + $0x64] ss:$16 sps:$4 sm:$0xff]   ;;  %v3391_v27 = vld [vmem:[#allocation4 + $0xc0] ss:$16 sps:$4 sm:$0xff]  }
  0x52   :  { %v2967_v53 = vcombine.high %v112_v46, %v116_v48  ;;  %v2966_v58 = vcombine.low %v112_v46, %v116_v48  ;;  %v132_v60 = vld [vmem:[#allocation2 + $0x1f8] sm:$0xff]  ;;  %v3381_v17 = vld [vmem:[#allocation4 + $0x84] ss:$16 sps:$4 sm:$0xff]   ;;  %v3397_v31 = vld [vmem:[#allocation4 + $0xe0] ss:$16 sps:$4 sm:$0xff]  }
  0x53   :  { %v2983_v4 = vcombine.high %v128_v59, %v132_v60  ;;  %v2982_v7 = vcombine.low %v128_v59, %v132_v60  ;;  %v3399_v28 = vld [vmem:[#allocation4 + $0xe4] ss:$16 sps:$4 sm:$0xff]   ;;  %v3409_v39 = vld [vmem:[#allocation4 + $0x120] ss:$16 sps:$4 sm:$0xff]   ;;  %v3418_v48 = vld [vmem:[#allocation4 + $0x148] ss:$16 sps:$4 sm:$0xff]  }
  0x54   :  { %508 = vmatpush1.bf16.msra.mxu0 %v2968_v54  ;;  %549 = vmatpush1.bf16.msra.mxu1 %v2970_v3  ;;  %v120_v54 = vld [vmem:[#allocation2 + $0x198] sm:$0xff]  ;;  %v3355_v3 = vld [vmem:[#allocation4] ss:$16 sps:$4 sm:$0xff]   ;;  %v3423_v43 = vld [vmem:[#allocation4 + $0x164] ss:$16 sps:$4 sm:$0xff]  }
  0x55   :  { %509 = vmatprep.subr.bf16.mxu0 %v2977_v56  ;;  %550 = vmatprep.subr.bf16.mxu1 %v2979_v6  ;;  %v124_v56 = vld [vmem:[#allocation2 + $0x1b8] sm:$0xff]  ;;  %v3415_v42 = vld [vmem:[#allocation4 + $0x140] ss:$16 sps:$4 sm:$0xff]   ;;  %v3435_v51 = vld [vmem:[#allocation4 + $0x1a4] ss:$16 sps:$4 sm:$0xff]  }
  0x56   :  { %v2975_v61 = vcombine.high %v120_v54, %v124_v56  ;;  %v3360_v6 = vld [vmem:[#allocation4 + $0xc] ss:$16 sps:$4 sm:$0xff]   ;;  %v3421_v46 = vld [vmem:[#allocation4 + $0x160] ss:$16 sps:$4 sm:$0xff]  }
  0x57   :  { %v3427_v50 = vld [vmem:[#allocation4 + $0x180] ss:$16 sps:$4 sm:$0xff]   ;;  %v3444_v60 = vld [vmem:[#allocation4 + $0x1cc] ss:$16 sps:$4 sm:$0xff]  }
  0x58   :  { %510 = vmatpush1.bf16.msra.mxu0 %v2976_v62  ;;  %551 = vmatpush1.bf16.msra.mxu1 %v2978_v11  ;;  %v3357_v62 = vld [vmem:[#allocation4 + $0x4] ss:$16 sps:$4 sm:$0xff]   ;;  %v3366_v11 = vld [vmem:[#allocation4 + $0x2c] ss:$16 sps:$4 sm:$0xff]   ;;  %v3439_v59 = vld [vmem:[#allocation4 + $0x1c0] ss:$16 sps:$4 sm:$0xff]  }
  0x59   :  { %577 = vmatprep.subr.bf16.mxu0 %v2925_v1  ;;  %618 = vmatprep.subr.bf16.mxu1 %v2927_v14  ;;  %v2974_v1 = vcombine.low %v120_v54, %v124_v56  ;;  %v3364_v14 = vld [vmem:[#allocation4 + $0x28] ss:$16 sps:$4 sm:$0xff]   ;;  %v3438_v56 = vld [vmem:[#allocation4 + $0x1ac] ss:$16 sps:$4 sm:$0xff]  }
  0x5a   :  { %v3430_v54 = vld [vmem:[#allocation4 + $0x188] ss:$16 sps:$4 sm:$0xff]  }
  0x5b   :  { %528 = vmatmul.mubr.bf16.vlgmr.msra.gmra.mrb[0].mxu0 %v3932_v2  ;;  %569 = vmatmul.mubr.bf16.vlgmr.msra.gmra.mrb[0].mxu1 %v3932_v2 }
  0x5c   :  { %578 = vmatpush1.bf16.msra.mxu0 %v2924_v8  ;;  %609 = vmatprep.mubr.bf16.mxu0 %v3850_v0  ;;  %v3361_v8 = vld [vmem:[#allocation4 + $0x20] ss:$16 sps:$4 sm:$0xff]  }
  0x5d   :  { %579 = vmatprep.subr.bf16.mxu0 %v2933_v10  ;;  %619 = vmatpush1.bf16.msra.mxu1 %v2926_v21  ;;  %v3358_v10 = vld [vmem:[#allocation4 + $0x8] ss:$16 sps:$4 sm:$0xff]   ;;  %v3387_v21 = vld [vmem:[#allocation4 + $0xa4] ss:$16 sps:$4 sm:$0xff]  }
  0x5e   :  { %650 = vmatprep.mubr.bf16.mxu1 %v3850_v0  ;;  %620 = vmatprep.subr.bf16.mxu1 %v2935_v22  ;;  %v2965_v0 = vcombine.high %v111_v35, %v115_v36  ;;  %v3376_v22 = vld [vmem:[#allocation4 + $0x68] ss:$16 sps:$4 sm:$0xff]   ;;  %v3403_v35 = vld [vmem:[#allocation4 + $0x100] ss:$16 sps:$4 sm:$0xff]   ;;  %v3411_v36 = vld [vmem:[#allocation4 + $0x124] ss:$16 sps:$4 sm:$0xff]  }
  0x60   :  { %580 = vmatpush1.bf16.msra.mxu0 %v2932_v16  ;;  %v3373_v16 = vld [vmem:[#allocation4 + $0x60] ss:$16 sps:$4 sm:$0xff]  }
  0x61   :  { %581 = vmatprep.subr.bf16.mxu0 %v2941_v18  ;;  %621 = vmatpush1.bf16.msra.mxu1 %v2934_v29  ;;  %v3370_v18 = vld [vmem:[#allocation4 + $0x48] ss:$16 sps:$4 sm:$0xff]  }
  0x62   :  { %622 = vmatprep.subr.bf16.mxu1 %v2943_v30  ;;  %v3388_v29 = vld [vmem:[#allocation4 + $0xa8] ss:$16 sps:$4 sm:$0xff]   ;;  %v3396_v30 = vld [vmem:[#allocation4 + $0xcc] ss:$16 sps:$4 sm:$0xff]  }
  0x64   :  { %582 = vmatpush1.bf16.msra.mxu0 %v2940_v24  ;;  %v3393_v24 = vld [vmem:[#allocation4 + $0xc4] ss:$16 sps:$4 sm:$0xff]  }
  0x65   :  { %583 = vmatprep.subr.bf16.mxu0 %v2949_v26  ;;  %623 = vmatpush1.bf16.msra.mxu1 %v2942_v37  ;;  %v3390_v26 = vld [vmem:[#allocation4 + $0xac] ss:$16 sps:$4 sm:$0xff]   ;;  %v3400_v37 = vld [vmem:[#allocation4 + $0xe8] ss:$16 sps:$4 sm:$0xff]  }
  0x66   :  { %624 = vmatprep.subr.bf16.mxu1 %v2951_v38  ;;  %v3408_v38 = vld [vmem:[#allocation4 + $0x10c] ss:$16 sps:$4 sm:$0xff]  }
  0x68   :  { %584 = vmatpush1.bf16.msra.mxu0 %v2948_v32  ;;  %v3405_v32 = vld [vmem:[#allocation4 + $0x104] ss:$16 sps:$4 sm:$0xff]  }
  0x69   :  { %585 = vmatprep.subr.bf16.mxu0 %v2957_v34  ;;  %625 = vmatpush1.bf16.msra.mxu1 %v2950_v44  ;;  %v3402_v34 = vld [vmem:[#allocation4 + $0xec] ss:$16 sps:$4 sm:$0xff]   ;;  %v3412_v44 = vld [vmem:[#allocation4 + $0x128] ss:$16 sps:$4 sm:$0xff]  }
  0x6a   :  { %626 = vmatprep.subr.bf16.mxu1 %v2959_v45  ;;  %v3420_v45 = vld [vmem:[#allocation4 + $0x14c] ss:$16 sps:$4 sm:$0xff]  }
  0x6c   :  { %586 = vmatpush1.bf16.msra.mxu0 %v2956_v40  ;;  %v3417_v40 = vld [vmem:[#allocation4 + $0x144] ss:$16 sps:$4 sm:$0xff]  }
  0x6d   :  { %587 = vmatprep.subr.bf16.mxu0 %v2965_v0  ;;  %627 = vmatpush1.bf16.msra.mxu1 %v2958_v52  ;;  %v3414_v0 = vld [vmem:[#allocation4 + $0x12c] ss:$16 sps:$4 sm:$0xff]   ;;  %v3424_v52 = vld [vmem:[#allocation4 + $0x168] ss:$16 sps:$4 sm:$0xff]  }
  0x6e   :  { %628 = vmatprep.subr.bf16.mxu1 %v2967_v53  ;;  %v3432_v53 = vld [vmem:[#allocation4 + $0x18c] ss:$16 sps:$4 sm:$0xff]  }
  0x70   :  { %588 = vmatpush1.bf16.msra.mxu0 %v2964_v47  ;;  %v3429_v47 = vld [vmem:[#allocation4 + $0x184] ss:$16 sps:$4 sm:$0xff]  }
  0x71   :  { %589 = vmatprep.subr.bf16.mxu0 %v2973_v49  ;;  %629 = vmatpush1.bf16.msra.mxu1 %v2966_v58  ;;  %v3426_v49 = vld [vmem:[#allocation4 + $0x16c] ss:$16 sps:$4 sm:$0xff]   ;;  %v3436_v58 = vld [vmem:[#allocation4 + $0x1a8] ss:$16 sps:$4 sm:$0xff]  }
  0x72   :  { %630 = vmatprep.subr.bf16.mxu1 %v2975_v61  ;;  %v3447_v61 = vld [vmem:[#allocation4 + $0x1e4] ss:$16 sps:$4 sm:$0xff]  }
  0x74   :  { %590 = vmatpush1.bf16.msra.mxu0 %v2972_v55  ;;  %v3433_v55 = vld [vmem:[#allocation4 + $0x1a0] ss:$16 sps:$4 sm:$0xff]  }
  0x75   :  { %591 = vmatprep.subr.bf16.mxu0 %v2981_v57  ;;  %631 = vmatpush1.bf16.msra.mxu1 %v2974_v1  ;;  %v3441_v57 = vld [vmem:[#allocation4 + $0x1c4] ss:$16 sps:$4 sm:$0xff]   ;;  %v3450_v1 = vld [vmem:[#allocation4 + $0x1ec] ss:$16 sps:$4 sm:$0xff]  }
  0x76   :  { %632 = vmatprep.subr.bf16.mxu1 %v2983_v4  ;;  %v3448_v4 = vld [vmem:[#allocation4 + $0x1e8] ss:$16 sps:$4 sm:$0xff]  }
  0x78   :  { %592 = vmatpush1.bf16.msra.mxu0 %v2980_v63  ;;  %v3445_v63 = vld [vmem:[#allocation4 + $0x1e0] ss:$16 sps:$4 sm:$0xff]  }
  0x79   :  { %2233 = vmatprep.subr.bf16.mxu0 %v3357_v62  ;;  %633 = vmatpush1.bf16.msra.mxu1 %v2982_v7  ;;  %v3442_v62 = vld [vmem:[#allocation4 + $0x1c8] ss:$16 sps:$4 sm:$0xff]  }
  0x7a   :  { %2397 = vmatprep.subr.bf16.mxu1 %v3360_v6  ;;  %v135_v6 = vlaneseq }
  0x7b   :  { %610 = vmatmul.mubr.bf16.vlgmr.msra.gmra.mrb[4].mxu0 %v3932_v2 }
  0x7c   :  { %2234 = vmatpush1.bf16.msra.mxu0 %v3355_v3  ;;  %651 = vmatmul.mubr.bf16.vlgmr.msra.gmra.mrb[4].mxu1 %v3932_v2  ;;  %v3385_v2 = vld [vmem:[#allocation4 + $0xa0] ss:$16 sps:$4 sm:$0xff]   ;;  %v3453_v3 = vld [vmem:[#allocation4 + $0x204] ss:$16 sps:$4 sm:$0xff]   ;;  %v3940_v7 = vshrl.u32 %v135_v6, 7 }
  0x7d   :  { %2235 = vmatprep.subr.bf16.mxu0 %v3363_v5  ;;  %2398 = vmatpush1.bf16.msra.mxu1 %v3358_v10  ;;  %v3456_v5 = vld [vmem:[#allocation4 + $0x20c] ss:$16 sps:$4 sm:$0xff]  }
  0x7e   :  { %2399 = vmatprep.subr.bf16.mxu1 %v3366_v11  ;;  %v141_v10 = vsub.s32 1, %v3940_v7 }
  0x80   :  { %2236 = vmatpush1.bf16.msra.mxu0 %v3361_v8  ;;  %v137_v8 = vsub.s32 0, %v3940_v7 }
  0x81   :  { %2237 = vmatprep.subr.bf16.mxu0 %v3369_v9  ;;  %2400 = vmatpush1.bf16.msra.mxu1 %v3364_v14  ;;  %v3946_v9 = vld [vmem:[%s4005_s2] sm:$0xff]  ;;  %v149_v14 = vsub.s32 3, %v3940_v7 }
  0x82   :  { %2401 = vmatprep.subr.bf16.mxu1 %v3372_v15  ;;  %v138_v11 = vrot.slane %v3946_v9, %v137_v8 }
  0x84   :  { %2238 = vmatpush1.bf16.msra.mxu0 %v3367_v12  ;;  %v142_v12 = vrot.slane %v3946_v9, %v141_v10 }
  0x85   :  { %2239 = vmatprep.subr.bf16.mxu0 %v3375_v13  ;;  %2402 = vmatpush1.bf16.msra.mxu1 %v3370_v18 }
  0x86   :  { %2403 = vmatprep.subr.bf16.mxu1 %v3378_v19 }
  0x88   :  { %2240 = vmatpush1.bf16.msra.mxu0 %v3373_v16 }
  0x89   :  { %2241 = vmatprep.subr.bf16.mxu0 %v3381_v17  ;;  %2404 = vmatpush1.bf16.msra.mxu1 %v3376_v22  ;;  %v150_v22 = vrot.slane %v3946_v9, %v149_v14 }
  0x8a   :  { %2405 = vmatprep.subr.bf16.mxu1 %v3384_v23 }
  0x8c   :  { %2242 = vmatpush1.bf16.msra.mxu0 %v3379_v20 }
  0x8d   :  { %2243 = vmatprep.subr.bf16.mxu0 %v3387_v21  ;;  %2406 = vmatpush1.bf16.msra.mxu1 %v3382_v25 }
  0x8e   :  { %2407 = vmatprep.subr.bf16.mxu1 %v3390_v26 }
  0x90   :  { %2244 = vmatpush1.bf16.msra.mxu0 %v3385_v2  ;;  %v3451_v2 = vld [vmem:[#allocation4 + $0x200] ss:$16 sps:$4 sm:$0xff]  }
  0x91   :  { %2245 = vmatprep.subr.bf16.mxu0 %v3393_v24  ;;  %2408 = vmatpush1.bf16.msra.mxu1 %v3388_v29  ;;  %v3454_v24 = vld [vmem:[#allocation4 + $0x208] ss:$16 sps:$4 sm:$0xff]  }
  0x92   :  { %2409 = vmatprep.subr.bf16.mxu1 %v3396_v30 }
  0x94   :  { %2246 = vmatpush1.bf16.msra.mxu0 %v3391_v27  ;;  %v3459_v27 = vld [vmem:[#allocation4 + $0x224] ss:$16 sps:$4 sm:$0xff]  }
  0x95   :  { %2247 = vmatprep.subr.bf16.mxu0 %v3399_v28  ;;  %2410 = vmatpush1.bf16.msra.mxu1 %v3394_v33  ;;  %v3462_v28 = vld [vmem:[#allocation4 + $0x22c] ss:$16 sps:$4 sm:$0xff]   ;;  %v3457_v33 = vld [vmem:[#allocation4 + $0x220] ss:$16 sps:$4 sm:$0xff]  }
  0x96   :  { %2411 = vmatprep.subr.bf16.mxu1 %v3402_v34  ;;  %v3460_v34 = vld [vmem:[#allocation4 + $0x228] ss:$16 sps:$4 sm:$0xff]  }
  0x98   :  { %2248 = vmatpush1.bf16.msra.mxu0 %v3397_v31 }
  0x99   :  { %2249 = vmatprep.subr.bf16.mxu0 %v3405_v32  ;;  %2412 = vmatpush1.bf16.msra.mxu1 %v3400_v37  ;;  %v3468_v37 = vld [vmem:[#allocation4 + $0x24c] ss:$16 sps:$4 sm:$0xff]  }
  0x9a   :  { %2413 = vmatprep.subr.bf16.mxu1 %v3408_v38 }
  0x9c   :  { %2250 = vmatpush1.bf16.msra.mxu0 %v3403_v35 }
  0x9d   :  { %2251 = vmatprep.subr.bf16.mxu0 %v3411_v36  ;;  %2414 = vmatpush1.bf16.msra.mxu1 %v3406_v41  ;;  %v3465_v36 = vld [vmem:[#allocation4 + $0x244] ss:$16 sps:$4 sm:$0xff]  }
  0x9e   :  { %2415 = vmatprep.subr.bf16.mxu1 %v3414_v0  ;;  %v3471_v41 = vld [vmem:[#allocation4 + $0x264] ss:$16 sps:$4 sm:$0xff]   ;;  %v3474_v0 = vld [vmem:[#allocation4 + $0x26c] ss:$16 sps:$4 sm:$0xff]  }
  0xa0   :  { %2252 = vmatpush1.bf16.msra.mxu0 %v3409_v39  ;;  %v3463_v39 = vld [vmem:[#allocation4 + $0x240] ss:$16 sps:$4 sm:$0xff]  }
  0xa1   :  { %2253 = vmatprep.subr.bf16.mxu0 %v3417_v40  ;;  %2416 = vmatpush1.bf16.msra.mxu1 %v3412_v44  ;;  %v3466_v40 = vld [vmem:[#allocation4 + $0x248] ss:$16 sps:$4 sm:$0xff]   ;;  %v3477_v44 = vld [vmem:[#allocation4 + $0x284] ss:$16 sps:$4 sm:$0xff]  }
  0xa2   :  { %2417 = vmatprep.subr.bf16.mxu1 %v3420_v45  ;;  %v3480_v45 = vld [vmem:[#allocation4 + $0x28c] ss:$16 sps:$4 sm:$0xff]  }
  0xa4   :  { %2254 = vmatpush1.bf16.msra.mxu0 %v3415_v42  ;;  %v3469_v42 = vld [vmem:[#allocation4 + $0x260] ss:$16 sps:$4 sm:$0xff]  }
  0xa5   :  { %2255 = vmatprep.subr.bf16.mxu0 %v3423_v43  ;;  %2418 = vmatpush1.bf16.msra.mxu1 %v3418_v48  ;;  %v3472_v43 = vld [vmem:[#allocation4 + $0x268] ss:$16 sps:$4 sm:$0xff]   ;;  %v3483_v48 = vld [vmem:[#allocation4 + $0x2a4] ss:$16 sps:$4 sm:$0xff]  }
  0xa6   :  { %2419 = vmatprep.subr.bf16.mxu1 %v3426_v49  ;;  %v3486_v49 = vld [vmem:[#allocation4 + $0x2ac] ss:$16 sps:$4 sm:$0xff]  }
  0xa8   :  { %2256 = vmatpush1.bf16.msra.mxu0 %v3421_v46  ;;  %v3475_v46 = vld [vmem:[#allocation4 + $0x280] ss:$16 sps:$4 sm:$0xff]  }
  0xa9   :  { %2257 = vmatprep.subr.bf16.mxu0 %v3429_v47  ;;  %2420 = vmatpush1.bf16.msra.mxu1 %v3424_v52  ;;  %v3478_v47 = vld [vmem:[#allocation4 + $0x288] ss:$16 sps:$4 sm:$0xff]   ;;  %v3489_v52 = vld [vmem:[#allocation4 + $0x2c4] ss:$16 sps:$4 sm:$0xff]  }
  0xaa   :  { %2421 = vmatprep.subr.bf16.mxu1 %v3432_v53  ;;  %v3492_v53 = vld [vmem:[#allocation4 + $0x2cc] ss:$16 sps:$4 sm:$0xff]  }
  0xac   :  { %2258 = vmatpush1.bf16.msra.mxu0 %v3427_v50  ;;  %v3481_v50 = vld [vmem:[#allocation4 + $0x2a0] ss:$16 sps:$4 sm:$0xff]  }
  0xad   :  { %2259 = vmatprep.subr.bf16.mxu0 %v3435_v51  ;;  %2422 = vmatpush1.bf16.msra.mxu1 %v3430_v54  ;;  %v3484_v51 = vld [vmem:[#allocation4 + $0x2a8] ss:$16 sps:$4 sm:$0xff]   ;;  %v3487_v54 = vld [vmem:[#allocation4 + $0x2c0] ss:$16 sps:$4 sm:$0xff]  }
  0xae   :  { %2423 = vmatprep.subr.bf16.mxu1 %v3438_v56  ;;  %v3495_v56 = vld [vmem:[#allocation4 + $0x2e4] ss:$16 sps:$4 sm:$0xff]  }
  0xb0   :  { %2260 = vmatpush1.bf16.msra.mxu0 %v3433_v55  ;;  %v3490_v55 = vld [vmem:[#allocation4 + $0x2c8] ss:$16 sps:$4 sm:$0xff]  }
  0xb1   :  { %2261 = vmatprep.subr.bf16.mxu0 %v3441_v57  ;;  %2424 = vmatpush1.bf16.msra.mxu1 %v3436_v58  ;;  %v3498_v57 = vld [vmem:[#allocation4 + $0x2ec] ss:$16 sps:$4 sm:$0xff]  }
  0xb2   :  { %2425 = vmatprep.subr.bf16.mxu1 %v3444_v60  ;;  %v3493_v60 = vld [vmem:[#allocation4 + $0x2e0] ss:$16 sps:$4 sm:$0xff]  }
  0xb4   :  { %2262 = vmatpush1.bf16.msra.mxu0 %v3439_v59 }
  0xb5   :  { %2263 = vmatprep.subr.bf16.mxu0 %v3447_v61  ;;  %2426 = vmatpush1.bf16.msra.mxu1 %v3442_v62  ;;  %v3496_v61 = vld [vmem:[#allocation4 + $0x2e8] ss:$16 sps:$4 sm:$0xff]  }
  0xb6   :  { %2427 = vmatprep.subr.bf16.mxu1 %v3450_v1  ;;  %v3504_v1 = vld [vmem:[#allocation4 + $0x30c] ss:$16 sps:$4 sm:$0xff]  }
  0xb8   :  { %2264 = vmatpush1.bf16.msra.mxu0 %v3445_v63  ;;  %v3501_v63 = vld [vmem:[#allocation4 + $0x304] ss:$16 sps:$4 sm:$0xff]  }
  0xb9   :  { %2274 = vmatprep.subr.bf16.mxu0 %v3453_v3  ;;  %2428 = vmatpush1.bf16.msra.mxu1 %v3448_v4  ;;  %v3499_v4 = vld [vmem:[#allocation4 + $0x300] ss:$16 sps:$4 sm:$0xff]  }
  0xba   :  { %2438 = vmatprep.subr.bf16.mxu1 %v3456_v5  ;;  %v3502_v5 = vld [vmem:[#allocation4 + $0x308] ss:$16 sps:$4 sm:$0xff]  }
 0x12e   :  { %v529_v13 = vpop.f32.mrb[0].mxu0  ;;  %v3959_v25 = vpop.f32.mrb[0].mxu1 }
 0x12f   :  { %v530_v15 = vadd.f32 %v529_v13, %v138_v11  ;;  %v531_v16 = vpop.f32.mrb[1].mxu0  ;;  %v572_v29 = vpop.f32.mrb[1].mxu1  ;;  %v3507_v11 = vld [vmem:[#allocation4 + $0x324] ss:$16 sps:$4 sm:$0xff]  }
 0x130   :  { %v532_v17 = vadd.f32 %v531_v16, %v142_v12  ;;  %v533_v18 = vpop.f32.mrb[2].mxu0  ;;  %v573_v30 = vadd.f32 %v572_v29, %v150_v22  ;;  %v574_v31 = vpop.f32.mrb[2].mxu1  ;;  %v3510_v12 = vld [vmem:[#allocation4 + $0x32c] ss:$16 sps:$4 sm:$0xff]   ;;  %v3514_v22 = vld [vmem:[#allocation4 + $0x348] ss:$16 sps:$4 sm:$0xff]  }
 0x131   :  { %v659_v19 = vmax.f32 %v530_v15, 0.0  ;;  %v534_v20 = vpop.f32.mrb[3].mxu0  ;;  %v575_v32 = vpop.f32.mrb[3].mxu1  ;;  %v3508_v18 = vld [vmem:[#allocation4 + $0x328] ss:$16 sps:$4 sm:$0xff]   ;;  %v145_v29 = vsub.s32 2, %v3940_v7 }
 0x132   :  { %v660_v21 = vmax.f32 %v532_v17, 0.0  ;;  %v662_v35 = vmax.f32 %v573_v30, 0.0  ;;  %v3505_v17 = vld [vmem:[#allocation4 + $0x320] ss:$16 sps:$4 sm:$0xff]   ;;  %v3516_v20 = vld [vmem:[#allocation4 + $0x34c] ss:$16 sps:$4 sm:$0xff]  }
 0x133   :  { %v667_v26 = vpack.c.bf16 %v659_v19, %v659_v19  ;;  %v3513_v19 = vld [vmem:[#allocation4 + $0x344] ss:$16 sps:$4 sm:$0xff]   ;;  %v3523_v30 = vld [vmem:[#allocation4 + $0x380] ss:$16 sps:$4 sm:$0xff]   ;;  %v3526_v31 = vld [vmem:[#allocation4 + $0x388] ss:$16 sps:$4 sm:$0xff]  }
 0x134   :  { %v668_v23 = vpack.c.bf16 %v660_v21, %v660_v21  ;;  %v670_v38 = vpack.c.bf16 %v662_v35, %v662_v35  ;;  %v3511_v21 = vld [vmem:[#allocation4 + $0x340] ss:$16 sps:$4 sm:$0xff]   ;;  %v3531_v32 = vld [vmem:[#allocation4 + $0x3a4] ss:$16 sps:$4 sm:$0xff]   ;;  %v146_v35 = vrot.slane %v3946_v9, %v145_v29 }
 0x136   :  { %2265 = vmatprep.mubr.bf16.mxu0 %v668_v23  ;;  %2429 = vmatprep.mubr.bf16.mxu1 %v668_v23  ;;  %v3519_v23 = vld [vmem:[#allocation4 + $0x364] ss:$16 sps:$4 sm:$0xff]  }
 0x137   :  { %2266 = vmatmul.mubr.bf16.vlgmr.msra.gmra.mrb[8].mxu0 %v667_v26  ;;  %2430 = vmatmul.mubr.bf16.vlgmr.msra.gmra.mrb[8].mxu1 %v667_v26  ;;  %v3520_v26 = vld [vmem:[#allocation4 + $0x368] ss:$16 sps:$4 sm:$0xff]  }
 0x138   :  { %2275 = vmatpush1.bf16.msra.mxu0 %v3451_v2  ;;  %2439 = vmatpush1.bf16.msra.mxu1 %v3454_v24  ;;  %v3522_v2 = vld [vmem:[#allocation4 + $0x36c] ss:$16 sps:$4 sm:$0xff]   ;;  %v3517_v24 = vld [vmem:[#allocation4 + $0x360] ss:$16 sps:$4 sm:$0xff]  }
 0x139   :  { %2276 = vmatprep.subr.bf16.mxu0 %v3459_v27  ;;  %2440 = vmatprep.subr.bf16.mxu1 %v3462_v28  ;;  %v3525_v27 = vld [vmem:[#allocation4 + $0x384] ss:$16 sps:$4 sm:$0xff]   ;;  %v3528_v28 = vld [vmem:[#allocation4 + $0x38c] ss:$16 sps:$4 sm:$0xff]  }
 0x13a   :  { %2306 = vmatprep.mubr.bf16.mxu0 %v670_v38  ;;  %2470 = vmatprep.mubr.bf16.mxu1 %v670_v38  ;;  %v3537_v38 = vld [vmem:[#allocation4 + $0x3c4] ss:$16 sps:$4 sm:$0xff]  }
 0x13c   :  { %2277 = vmatpush1.bf16.msra.mxu0 %v3457_v33  ;;  %2441 = vmatpush1.bf16.msra.mxu1 %v3460_v34  ;;  %v3534_v33 = vld [vmem:[#allocation4 + $0x3ac] ss:$16 sps:$4 sm:$0xff]   ;;  %v157_v34 = vsub.s32 5, %v3940_v7 }
 0x13d   :  { %2278 = vmatprep.subr.bf16.mxu0 %v3465_v36  ;;  %2442 = vmatprep.subr.bf16.mxu1 %v3468_v37  ;;  %v3529_v36 = vld [vmem:[#allocation4 + $0x3a0] ss:$16 sps:$4 sm:$0xff]   ;;  %v3532_v37 = vld [vmem:[#allocation4 + $0x3a8] ss:$16 sps:$4 sm:$0xff]  }
 0x140   :  { %2279 = vmatpush1.bf16.msra.mxu0 %v3463_v39  ;;  %2443 = vmatpush1.bf16.msra.mxu1 %v3466_v40  ;;  %v3540_v39 = vld [vmem:[#allocation4 + $0x3cc] ss:$16 sps:$4 sm:$0xff]   ;;  %v158_v40 = vrot.slane %v3946_v9, %v157_v34  ;;  %v3603_v34 = vld [vmem:[#allocation4 + $0x524] ss:$16 sps:$4 sm:$0xff]  }
 0x141   :  { %2280 = vmatprep.subr.bf16.mxu0 %v3471_v41  ;;  %2444 = vmatprep.subr.bf16.mxu1 %v3474_v0  ;;  %v571_v41 = vadd.f32 %v3959_v25, %v146_v35  ;;  %v3535_v0 = vld [vmem:[#allocation4 + $0x3c0] ss:$16 sps:$4 sm:$0xff]   ;;  %v3606_v35 = vld [vmem:[#allocation4 + $0x52c] ss:$16 sps:$4 sm:$0xff]  }
 0x144   :  { %2281 = vmatpush1.bf16.msra.mxu0 %v3469_v42  ;;  %2445 = vmatpush1.bf16.msra.mxu1 %v3472_v43  ;;  %v3538_v42 = vld [vmem:[#allocation4 + $0x3c8] ss:$16 sps:$4 sm:$0xff]   ;;  %v3543_v43 = vld [vmem:[#allocation4 + $0x3e4] ss:$16 sps:$4 sm:$0xff]  }
 0x145   :  { %2282 = vmatprep.subr.bf16.mxu0 %v3477_v44  ;;  %2446 = vmatprep.subr.bf16.mxu1 %v3480_v45  ;;  %v3546_v44 = vld [vmem:[#allocation4 + $0x3ec] ss:$16 sps:$4 sm:$0xff]  }
 0x148   :  { %2283 = vmatpush1.bf16.msra.mxu0 %v3475_v46  ;;  %2447 = vmatpush1.bf16.msra.mxu1 %v3478_v47  ;;  %v661_v46 = vmax.f32 %v571_v41, 0.0  ;;  %v3541_v47 = vld [vmem:[#allocation4 + $0x3e0] ss:$16 sps:$4 sm:$0xff]   ;;  %v3610_v41 = vld [vmem:[#allocation4 + $0x548] ss:$16 sps:$4 sm:$0xff]  }
 0x149   :  { %2284 = vmatprep.subr.bf16.mxu0 %v3483_v48  ;;  %2448 = vmatprep.subr.bf16.mxu1 %v3486_v49  ;;  %v3544_v48 = vld [vmem:[#allocation4 + $0x3e8] ss:$16 sps:$4 sm:$0xff]   ;;  %v3549_v49 = vld [vmem:[#allocation4 + $0x404] ss:$16 sps:$4 sm:$0xff]  }
 0x14c   :  { %2285 = vmatpush1.bf16.msra.mxu0 %v3481_v50  ;;  %2449 = vmatpush1.bf16.msra.mxu1 %v3484_v51  ;;  %v3552_v50 = vld [vmem:[#allocation4 + $0x40c] ss:$16 sps:$4 sm:$0xff]   ;;  %v669_v51 = vpack.c.bf16 %v661_v46, %v661_v46 }
 0x14d   :  { %2286 = vmatprep.subr.bf16.mxu0 %v3489_v52  ;;  %2450 = vmatprep.subr.bf16.mxu1 %v3492_v53  ;;  %v3547_v52 = vld [vmem:[#allocation4 + $0x400] ss:$16 sps:$4 sm:$0xff]   ;;  %v3550_v53 = vld [vmem:[#allocation4 + $0x408] ss:$16 sps:$4 sm:$0xff]   ;;  %v3624_v46 = vld [vmem:[#allocation4 + $0x58c] ss:$16 sps:$4 sm:$0xff]  }
 0x14e   :  { %v3961_v58 = vpop.f32.mrb[4].mxu0 }
 0x14f   :  { %v3963_v59 = vpop.f32.mrb[5].mxu0  ;;  %v3965_v6 = vpop.f32.mrb[4].mxu1 }
 0x150   :  { %2287 = vmatpush1.bf16.msra.mxu0 %v3487_v54  ;;  %2451 = vmatpush1.bf16.msra.mxu1 %v3490_v55  ;;  %v615_v62 = vpop.f32.mrb[6].mxu0  ;;  %v3967_v13 = vpop.f32.mrb[5].mxu1  ;;  %v614_v45 = vadd.f32 %v3963_v59, %v158_v40  ;;  %v3555_v54 = vld [vmem:[#allocation4 + $0x424] ss:$16 sps:$4 sm:$0xff]   ;;  %v3558_v55 = vld [vmem:[#allocation4 + $0x42c] ss:$16 sps:$4 sm:$0xff]  }
 0x151   :  { %2288 = vmatprep.subr.bf16.mxu0 %v3495_v56  ;;  %2452 = vmatprep.subr.bf16.mxu1 %v3498_v57  ;;  %v616_v3 = vpop.f32.mrb[7].mxu0  ;;  %v656_v15 = vpop.f32.mrb[6].mxu1  ;;  %v3553_v57 = vld [vmem:[#allocation4 + $0x420] ss:$16 sps:$4 sm:$0xff]   ;;  %v3556_v59 = vld [vmem:[#allocation4 + $0x428] ss:$16 sps:$4 sm:$0xff]  }
 0x152   :  { %v657_v16 = vpop.f32.mrb[7].mxu1  ;;  %v664_v25 = vmax.f32 %v614_v45, 0.0  ;;  %v3559_v62 = vld [vmem:[#allocation4 + $0x440] ss:$16 sps:$4 sm:$0xff]   ;;  %v3570_v3 = vld [vmem:[#allocation4 + $0x46c] ss:$16 sps:$4 sm:$0xff]  }
 0x153   :  { %v3571_v15 = vld [vmem:[#allocation4 + $0x480] ss:$16 sps:$4 sm:$0xff]   ;;  %v3574_v16 = vld [vmem:[#allocation4 + $0x488] ss:$16 sps:$4 sm:$0xff]   ;;  %v3621_v45 = vld [vmem:[#allocation4 + $0x584] ss:$16 sps:$4 sm:$0xff]  }
 0x154   :  { %2289 = vmatpush1.bf16.msra.mxu0 %v3493_v60  ;;  %2453 = vmatpush1.bf16.msra.mxu1 %v3496_v61  ;;  %v672_v56 = vpack.c.bf16 %v664_v25, %v664_v25  ;;  %v3561_v60 = vld [vmem:[#allocation4 + $0x444] ss:$16 sps:$4 sm:$0xff]   ;;  %v3564_v61 = vld [vmem:[#allocation4 + $0x44c] ss:$16 sps:$4 sm:$0xff]   ;;  %v3607_v40 = vld [vmem:[#allocation4 + $0x540] ss:$16 sps:$4 sm:$0xff]  }
 0x155   :  { %2290 = vmatprep.subr.bf16.mxu0 %v3501_v63  ;;  %2454 = vmatprep.subr.bf16.mxu1 %v3504_v1  ;;  %v3562_v63 = vld [vmem:[#allocation4 + $0x448] ss:$16 sps:$4 sm:$0xff]   ;;  %v3567_v1 = vld [vmem:[#allocation4 + $0x464] ss:$16 sps:$4 sm:$0xff]   ;;  %v3630_v25 = vld [vmem:[#allocation4 + $0x5ac] ss:$16 sps:$4 sm:$0xff]  }
 0x158   :  { %2291 = vmatpush1.bf16.msra.mxu0 %v3499_v4  ;;  %2455 = vmatpush1.bf16.msra.mxu1 %v3502_v5  ;;  %v3565_v4 = vld [vmem:[#allocation4 + $0x460] ss:$16 sps:$4 sm:$0xff]   ;;  %v3568_v5 = vld [vmem:[#allocation4 + $0x468] ss:$16 sps:$4 sm:$0xff]  }
 0x159   :  { %2292 = vmatprep.subr.bf16.mxu0 %v3507_v11  ;;  %2456 = vmatprep.subr.bf16.mxu1 %v3510_v12  ;;  %v3573_v11 = vld [vmem:[#allocation4 + $0x484] ss:$16 sps:$4 sm:$0xff]   ;;  %v3576_v12 = vld [vmem:[#allocation4 + $0x48c] ss:$16 sps:$4 sm:$0xff]  }
 0x15c   :  { %2293 = vmatpush1.bf16.msra.mxu0 %v3505_v17  ;;  %2457 = vmatpush1.bf16.msra.mxu1 %v3508_v18  ;;  %v3579_v17 = vld [vmem:[#allocation4 + $0x4a4] ss:$16 sps:$4 sm:$0xff]   ;;  %v3582_v18 = vld [vmem:[#allocation4 + $0x4ac] ss:$16 sps:$4 sm:$0xff]  }
 0x15d   :  { %2294 = vmatprep.subr.bf16.mxu0 %v3513_v19  ;;  %2458 = vmatprep.subr.bf16.mxu1 %v3516_v20  ;;  %v3577_v19 = vld [vmem:[#allocation4 + $0x4a0] ss:$16 sps:$4 sm:$0xff]   ;;  %v3580_v20 = vld [vmem:[#allocation4 + $0x4a8] ss:$16 sps:$4 sm:$0xff]  }
 0x160   :  { %2295 = vmatpush1.bf16.msra.mxu0 %v3511_v21  ;;  %2459 = vmatpush1.bf16.msra.mxu1 %v3514_v22  ;;  %v3585_v21 = vld [vmem:[#allocation4 + $0x4c4] ss:$16 sps:$4 sm:$0xff]   ;;  %v3588_v22 = vld [vmem:[#allocation4 + $0x4cc] ss:$16 sps:$4 sm:$0xff]  }
 0x161   :  { %2296 = vmatprep.subr.bf16.mxu0 %v3519_v23  ;;  %2460 = vmatprep.subr.bf16.mxu1 %v3522_v2  ;;  %v3583_v23 = vld [vmem:[#allocation4 + $0x4c0] ss:$16 sps:$4 sm:$0xff]   ;;  %v3586_v2 = vld [vmem:[#allocation4 + $0x4c8] ss:$16 sps:$4 sm:$0xff]  }
 0x164   :  { %2297 = vmatpush1.bf16.msra.mxu0 %v3517_v24  ;;  %2461 = vmatpush1.bf16.msra.mxu1 %v3520_v26  ;;  %v3591_v24 = vld [vmem:[#allocation4 + $0x4e4] ss:$16 sps:$4 sm:$0xff]   ;;  %v3594_v26 = vld [vmem:[#allocation4 + $0x4ec] ss:$16 sps:$4 sm:$0xff]  }
 0x165   :  { %2298 = vmatprep.subr.bf16.mxu0 %v3525_v27  ;;  %2462 = vmatprep.subr.bf16.mxu1 %v3528_v28  ;;  %v3589_v27 = vld [vmem:[#allocation4 + $0x4e0] ss:$16 sps:$4 sm:$0xff]   ;;  %v3592_v28 = vld [vmem:[#allocation4 + $0x4e8] ss:$16 sps:$4 sm:$0xff]  }
 0x168   :  { %2299 = vmatpush1.bf16.msra.mxu0 %v3523_v30  ;;  %2463 = vmatpush1.bf16.msra.mxu1 %v3526_v31  ;;  %v3597_v30 = vld [vmem:[#allocation4 + $0x504] ss:$16 sps:$4 sm:$0xff]   ;;  %v3600_v31 = vld [vmem:[#allocation4 + $0x50c] ss:$16 sps:$4 sm:$0xff]  }
 0x169   :  { %2300 = vmatprep.subr.bf16.mxu0 %v3531_v32  ;;  %2464 = vmatprep.subr.bf16.mxu1 %v3534_v33  ;;  %v3595_v32 = vld [vmem:[#allocation4 + $0x500] ss:$16 sps:$4 sm:$0xff]   ;;  %v3598_v33 = vld [vmem:[#allocation4 + $0x508] ss:$16 sps:$4 sm:$0xff]  }
 0x16c   :  { %2301 = vmatpush1.bf16.msra.mxu0 %v3529_v36  ;;  %2465 = vmatpush1.bf16.msra.mxu1 %v3532_v37  ;;  %v3601_v36 = vld [vmem:[#allocation4 + $0x520] ss:$16 sps:$4 sm:$0xff]   ;;  %v3604_v37 = vld [vmem:[#allocation4 + $0x528] ss:$16 sps:$4 sm:$0xff]  }
 0x16d   :  { %2302 = vmatprep.subr.bf16.mxu0 %v3537_v38  ;;  %2466 = vmatprep.subr.bf16.mxu1 %v3540_v39  ;;  %v3609_v38 = vld [vmem:[#allocation4 + $0x544] ss:$16 sps:$4 sm:$0xff]   ;;  %v3612_v39 = vld [vmem:[#allocation4 + $0x54c] ss:$16 sps:$4 sm:$0xff]  }
 0x170   :  { %2303 = vmatpush1.bf16.msra.mxu0 %v3535_v0  ;;  %2467 = vmatpush1.bf16.msra.mxu1 %v3538_v42  ;;  %v3615_v0 = vld [vmem:[#allocation4 + $0x564] ss:$16 sps:$4 sm:$0xff]   ;;  %v3618_v42 = vld [vmem:[#allocation4 + $0x56c] ss:$16 sps:$4 sm:$0xff]  }
 0x171   :  { %2304 = vmatprep.subr.bf16.mxu0 %v3543_v43  ;;  %2468 = vmatprep.subr.bf16.mxu1 %v3546_v44  ;;  %v3613_v43 = vld [vmem:[#allocation4 + $0x560] ss:$16 sps:$4 sm:$0xff]   ;;  %v3616_v44 = vld [vmem:[#allocation4 + $0x568] ss:$16 sps:$4 sm:$0xff]  }
 0x174   :  { %2305 = vmatpush1.bf16.msra.mxu0 %v3541_v47  ;;  %2469 = vmatpush1.bf16.msra.mxu1 %v3544_v48  ;;  %v153_v47 = vsub.s32 4, %v3940_v7  ;;  %v3619_v48 = vld [vmem:[#allocation4 + $0x580] ss:$16 sps:$4 sm:$0xff]  }
 0x175   :  { %2315 = vmatprep.subr.bf16.mxu0 %v3549_v49  ;;  %2479 = vmatprep.subr.bf16.mxu1 %v3552_v50  ;;  %v3622_v49 = vld [vmem:[#allocation4 + $0x588] ss:$16 sps:$4 sm:$0xff]   ;;  %v3627_v50 = vld [vmem:[#allocation4 + $0x5a4] ss:$16 sps:$4 sm:$0xff]  }
 0x177   :  { %2307 = vmatmul.mubr.bf16.vlgmr.msra.gmra.mrb[8].mxu0 %v669_v51  ;;  %2471 = vmatmul.mubr.bf16.vlgmr.msra.gmra.mrb[8].mxu1 %v669_v51  ;;  %v165_v51 = vsub.s32 7, %v3940_v7 }
 0x178   :  { %2316 = vmatpush1.bf16.msra.mxu0 %v3547_v52  ;;  %2480 = vmatpush1.bf16.msra.mxu1 %v3550_v53  ;;  %v154_v52 = vrot.slane %v3946_v9, %v153_v47  ;;  %v3625_v53 = vld [vmem:[#allocation4 + $0x5a0] ss:$16 sps:$4 sm:$0xff]   ;;  %v3696_v47 = vld [vmem:[#allocation4 + $0x70c] ss:$16 sps:$4 sm:$0xff]  }
 0x179   :  { %2317 = vmatprep.subr.bf16.mxu0 %v3555_v54  ;;  %2481 = vmatprep.subr.bf16.mxu1 %v3558_v55  ;;  %v3628_v54 = vld [vmem:[#allocation4 + $0x5a8] ss:$16 sps:$4 sm:$0xff]   ;;  %v3633_v55 = vld [vmem:[#allocation4 + $0x5c4] ss:$16 sps:$4 sm:$0xff]  }
 0x17a   :  { %2347 = vmatprep.mubr.bf16.mxu0 %v672_v56  ;;  %2511 = vmatprep.mubr.bf16.mxu1 %v672_v56  ;;  %v3636_v56 = vld [vmem:[#allocation4 + $0x5cc] ss:$16 sps:$4 sm:$0xff]  }
 0x17c   :  { %2318 = vmatpush1.bf16.msra.mxu0 %v3553_v57  ;;  %2482 = vmatpush1.bf16.msra.mxu1 %v3556_v59  ;;  %v166_v57 = vrot.slane %v3946_v9, %v165_v51  ;;  %v612_v59 = vadd.f32 %v3961_v58, %v154_v52  ;;  %v3697_v51 = vld [vmem:[#allocation4 + $0x720] ss:$16 sps:$4 sm:$0xff]   ;;  %v3700_v52 = vld [vmem:[#allocation4 + $0x728] ss:$16 sps:$4 sm:$0xff]  }
 0x17d   :  { %2319 = vmatprep.subr.bf16.mxu0 %v3561_v60  ;;  %2483 = vmatprep.subr.bf16.mxu1 %v3564_v61  ;;  %v3631_v60 = vld [vmem:[#allocation4 + $0x5c0] ss:$16 sps:$4 sm:$0xff]   ;;  %v3634_v61 = vld [vmem:[#allocation4 + $0x5c8] ss:$16 sps:$4 sm:$0xff]  }
 0x180   :  { %2320 = vmatpush1.bf16.msra.mxu0 %v3559_v62  ;;  %2484 = vmatpush1.bf16.msra.mxu1 %v3562_v63  ;;  %v3639_v62 = vld [vmem:[#allocation4 + $0x5e4] ss:$16 sps:$4 sm:$0xff]   ;;  %v3642_v63 = vld [vmem:[#allocation4 + $0x5ec] ss:$16 sps:$4 sm:$0xff]  }
 0x181   :  { %2321 = vmatprep.subr.bf16.mxu0 %v3567_v1  ;;  %2485 = vmatprep.subr.bf16.mxu1 %v3570_v3  ;;  %v655_v1 = vadd.f32 %v3967_v13, %v166_v57  ;;  %v663_v3 = vmax.f32 %v612_v59, 0.0  ;;  %v3711_v57 = vld [vmem:[#allocation4 + $0x764] ss:$16 sps:$4 sm:$0xff]   ;;  %v3714_v59 = vld [vmem:[#allocation4 + $0x76c] ss:$16 sps:$4 sm:$0xff]  }
 0x183   :  { %v666_v58 = vmax.f32 %v655_v1, 0.0  ;;  %v3715_v1 = vld [vmem:[#allocation4 + $0x780] ss:$16 sps:$4 sm:$0xff]  }
 0x184   :  { %2322 = vmatpush1.bf16.msra.mxu0 %v3565_v4  ;;  %2486 = vmatpush1.bf16.msra.mxu1 %v3568_v5  ;;  %v3637_v4 = vld [vmem:[#allocation4 + $0x5e0] ss:$16 sps:$4 sm:$0xff]   ;;  %v3640_v5 = vld [vmem:[#allocation4 + $0x5e8] ss:$16 sps:$4 sm:$0xff]  }
 0x185   :  { %2323 = vmatprep.subr.bf16.mxu0 %v3573_v11  ;;  %2487 = vmatprep.subr.bf16.mxu1 %v3576_v12  ;;  %v3645_v11 = vld [vmem:[#allocation4 + $0x604] ss:$16 sps:$4 sm:$0xff]   ;;  %v3648_v12 = vld [vmem:[#allocation4 + $0x60c] ss:$16 sps:$4 sm:$0xff]   ;;  %v674_v13 = vpack.c.bf16 %v666_v58, %v666_v58  ;;  %v3724_v58 = vld [vmem:[#allocation4 + $0x7a8] ss:$16 sps:$4 sm:$0xff]  }
 0x188   :  { %2324 = vmatpush1.bf16.msra.mxu0 %v3571_v15  ;;  %2488 = vmatpush1.bf16.msra.mxu1 %v3574_v16  ;;  %v671_v15 = vpack.c.bf16 %v663_v3, %v663_v3  ;;  %v3643_v16 = vld [vmem:[#allocation4 + $0x600] ss:$16 sps:$4 sm:$0xff]   ;;  %v3718_v3 = vld [vmem:[#allocation4 + $0x788] ss:$16 sps:$4 sm:$0xff]  }
 0x189   :  { %2325 = vmatprep.subr.bf16.mxu0 %v3579_v17  ;;  %2489 = vmatprep.subr.bf16.mxu1 %v3582_v18  ;;  %v3646_v17 = vld [vmem:[#allocation4 + $0x608] ss:$16 sps:$4 sm:$0xff]   ;;  %v3651_v18 = vld [vmem:[#allocation4 + $0x624] ss:$16 sps:$4 sm:$0xff]  }
 0x18c   :  { %2326 = vmatpush1.bf16.msra.mxu0 %v3577_v19  ;;  %2490 = vmatpush1.bf16.msra.mxu1 %v3580_v20  ;;  %v3654_v19 = vld [vmem:[#allocation4 + $0x62c] ss:$16 sps:$4 sm:$0xff]   ;;  %v3649_v20 = vld [vmem:[#allocation4 + $0x620] ss:$16 sps:$4 sm:$0xff]  }
 0x18d   :  { %2327 = vmatprep.subr.bf16.mxu0 %v3585_v21  ;;  %2491 = vmatprep.subr.bf16.mxu1 %v3588_v22  ;;  %v3652_v21 = vld [vmem:[#allocation4 + $0x628] ss:$16 sps:$4 sm:$0xff]   ;;  %v3657_v22 = vld [vmem:[#allocation4 + $0x644] ss:$16 sps:$4 sm:$0xff]  }
 0x190   :  { %2328 = vmatpush1.bf16.msra.mxu0 %v3583_v23  ;;  %2492 = vmatpush1.bf16.msra.mxu1 %v3586_v2  ;;  %v3660_v23 = vld [vmem:[#allocation4 + $0x64c] ss:$16 sps:$4 sm:$0xff]   ;;  %v3655_v2 = vld [vmem:[#allocation4 + $0x640] ss:$16 sps:$4 sm:$0xff]  }
 0x191   :  { %2329 = vmatprep.subr.bf16.mxu0 %v3591_v24  ;;  %2493 = vmatprep.subr.bf16.mxu1 %v3594_v26  ;;  %v3658_v24 = vld [vmem:[#allocation4 + $0x648] ss:$16 sps:$4 sm:$0xff]   ;;  %v3663_v26 = vld [vmem:[#allocation4 + $0x664] ss:$16 sps:$4 sm:$0xff]  }
 0x194   :  { %2330 = vmatpush1.bf16.msra.mxu0 %v3589_v27  ;;  %2494 = vmatpush1.bf16.msra.mxu1 %v3592_v28  ;;  %v3666_v27 = vld [vmem:[#allocation4 + $0x66c] ss:$16 sps:$4 sm:$0xff]   ;;  %v3661_v28 = vld [vmem:[#allocation4 + $0x660] ss:$16 sps:$4 sm:$0xff]  }
 0x195   :  { %2331 = vmatprep.subr.bf16.mxu0 %v3597_v30  ;;  %2495 = vmatprep.subr.bf16.mxu1 %v3600_v31  ;;  %v3664_v30 = vld [vmem:[#allocation4 + $0x668] ss:$16 sps:$4 sm:$0xff]   ;;  %v3669_v31 = vld [vmem:[#allocation4 + $0x684] ss:$16 sps:$4 sm:$0xff]  }
 0x198   :  { %2332 = vmatpush1.bf16.msra.mxu0 %v3595_v32  ;;  %2496 = vmatpush1.bf16.msra.mxu1 %v3598_v33  ;;  %v3672_v32 = vld [vmem:[#allocation4 + $0x68c] ss:$16 sps:$4 sm:$0xff]   ;;  %v3667_v33 = vld [vmem:[#allocation4 + $0x680] ss:$16 sps:$4 sm:$0xff]  }
 0x199   :  { %2333 = vmatprep.subr.bf16.mxu0 %v3603_v34  ;;  %2497 = vmatprep.subr.bf16.mxu1 %v3606_v35  ;;  %v3670_v34 = vld [vmem:[#allocation4 + $0x688] ss:$16 sps:$4 sm:$0xff]   ;;  %v3675_v35 = vld [vmem:[#allocation4 + $0x6a4] ss:$16 sps:$4 sm:$0xff]  }
 0x19c   :  { %2334 = vmatpush1.bf16.msra.mxu0 %v3601_v36  ;;  %2498 = vmatpush1.bf16.msra.mxu1 %v3604_v37  ;;  %v3678_v36 = vld [vmem:[#allocation4 + $0x6ac] ss:$16 sps:$4 sm:$0xff]   ;;  %v3673_v37 = vld [vmem:[#allocation4 + $0x6a0] ss:$16 sps:$4 sm:$0xff]  }
 0x19d   :  { %2335 = vmatprep.subr.bf16.mxu0 %v3609_v38  ;;  %2499 = vmatprep.subr.bf16.mxu1 %v3612_v39  ;;  %v3676_v38 = vld [vmem:[#allocation4 + $0x6a8] ss:$16 sps:$4 sm:$0xff]   ;;  %v3681_v39 = vld [vmem:[#allocation4 + $0x6c4] ss:$16 sps:$4 sm:$0xff]  }
 0x1a0   :  { %2336 = vmatpush1.bf16.msra.mxu0 %v3607_v40  ;;  %2500 = vmatpush1.bf16.msra.mxu1 %v3610_v41  ;;  %v3684_v40 = vld [vmem:[#allocation4 + $0x6cc] ss:$16 sps:$4 sm:$0xff]   ;;  %v3679_v41 = vld [vmem:[#allocation4 + $0x6c0] ss:$16 sps:$4 sm:$0xff]  }
 0x1a1   :  { %2337 = vmatprep.subr.bf16.mxu0 %v3615_v0  ;;  %2501 = vmatprep.subr.bf16.mxu1 %v3618_v42  ;;  %v3682_v0 = vld [vmem:[#allocation4 + $0x6c8] ss:$16 sps:$4 sm:$0xff]   ;;  %v3687_v42 = vld [vmem:[#allocation4 + $0x6e4] ss:$16 sps:$4 sm:$0xff]  }
 0x1a4   :  { %2338 = vmatpush1.bf16.msra.mxu0 %v3613_v43  ;;  %2502 = vmatpush1.bf16.msra.mxu1 %v3616_v44  ;;  %v3690_v43 = vld [vmem:[#allocation4 + $0x6ec] ss:$16 sps:$4 sm:$0xff]   ;;  %v3685_v44 = vld [vmem:[#allocation4 + $0x6e0] ss:$16 sps:$4 sm:$0xff]  }
 0x1a5   :  { %2339 = vmatprep.subr.bf16.mxu0 %v3621_v45  ;;  %2503 = vmatprep.subr.bf16.mxu1 %v3624_v46  ;;  %v3688_v45 = vld [vmem:[#allocation4 + $0x6e8] ss:$16 sps:$4 sm:$0xff]   ;;  %v3693_v46 = vld [vmem:[#allocation4 + $0x704] ss:$16 sps:$4 sm:$0xff]  }
 0x1a8   :  { %2340 = vmatpush1.bf16.msra.mxu0 %v3619_v48  ;;  %2504 = vmatpush1.bf16.msra.mxu1 %v3622_v49  ;;  %v3691_v48 = vld [vmem:[#allocation4 + $0x700] ss:$16 sps:$4 sm:$0xff]   ;;  %v3694_v49 = vld [vmem:[#allocation4 + $0x708] ss:$16 sps:$4 sm:$0xff]  }
 0x1a9   :  { %2341 = vmatprep.subr.bf16.mxu0 %v3627_v50  ;;  %2505 = vmatprep.subr.bf16.mxu1 %v3630_v25  ;;  %v3699_v50 = vld [vmem:[#allocation4 + $0x724] ss:$16 sps:$4 sm:$0xff]   ;;  %v3702_v25 = vld [vmem:[#allocation4 + $0x72c] ss:$16 sps:$4 sm:$0xff]  }
 0x1ac   :  { %2342 = vmatpush1.bf16.msra.mxu0 %v3625_v53  ;;  %2506 = vmatpush1.bf16.msra.mxu1 %v3628_v54  ;;  %v3705_v53 = vld [vmem:[#allocation4 + $0x744] ss:$16 sps:$4 sm:$0xff]   ;;  %v3708_v54 = vld [vmem:[#allocation4 + $0x74c] ss:$16 sps:$4 sm:$0xff]  }
 0x1ad   :  { %2343 = vmatprep.subr.bf16.mxu0 %v3633_v55  ;;  %2507 = vmatprep.subr.bf16.mxu1 %v3636_v56  ;;  %v3703_v55 = vld [vmem:[#allocation4 + $0x740] ss:$16 sps:$4 sm:$0xff]   ;;  %v3706_v56 = vld [vmem:[#allocation4 + $0x748] ss:$16 sps:$4 sm:$0xff]  }
 0x1b0   :  { %2344 = vmatpush1.bf16.msra.mxu0 %v3631_v60  ;;  %2508 = vmatpush1.bf16.msra.mxu1 %v3634_v61  ;;  %v3709_v60 = vld [vmem:[#allocation4 + $0x760] ss:$16 sps:$4 sm:$0xff]   ;;  %v3712_v61 = vld [vmem:[#allocation4 + $0x768] ss:$16 sps:$4 sm:$0xff]  }
 0x1b1   :  { %2345 = vmatprep.subr.bf16.mxu0 %v3639_v62  ;;  %2509 = vmatprep.subr.bf16.mxu1 %v3642_v63  ;;  %v3717_v62 = vld [vmem:[#allocation4 + $0x784] ss:$16 sps:$4 sm:$0xff]   ;;  %v3720_v63 = vld [vmem:[#allocation4 + $0x78c] ss:$16 sps:$4 sm:$0xff]  }
 0x1b4   :  { %2346 = vmatpush1.bf16.msra.mxu0 %v3637_v4  ;;  %2510 = vmatpush1.bf16.msra.mxu1 %v3640_v5  ;;  %v161_v4 = vsub.s32 6, %v3940_v7  ;;  %v3723_v5 = vld [vmem:[#allocation4 + $0x7a4] ss:$16 sps:$4 sm:$0xff]  }
 0x1b5   :  { %2356 = vmatprep.subr.bf16.mxu0 %v3645_v11  ;;  %2520 = vmatprep.subr.bf16.mxu1 %v3648_v12  ;;  %v3726_v11 = vld [vmem:[#allocation4 + $0x7ac] ss:$16 sps:$4 sm:$0xff]   ;;  %v3721_v12 = vld [vmem:[#allocation4 + $0x7a0] ss:$16 sps:$4 sm:$0xff]  }
 0x1b7   :  { %2348 = vmatmul.mubr.bf16.vlgmr.msra.gmra.mrb[8].mxu0 %v671_v15  ;;  %2512 = vmatmul.mubr.bf16.vlgmr.msra.gmra.mrb[8].mxu1 %v671_v15  ;;  %v162_v15 = vrot.slane %v3946_v9, %v161_v4  ;;  %v3739_v9 = vld [vmem:[#allocation6 + $0x40] sm:$0xff]  }
 0x1b8   :  { %2357 = vmatpush1.bf16.msra.mxu0 %v3643_v16  ;;  %2521 = vmatpush1.bf16.msra.mxu1 %v3646_v17  ;;  %v3729_v16 = vld [vmem:[#allocation4 + $0x7c4] ss:$16 sps:$4 sm:$0xff]   ;;  %v3732_v17 = vld [vmem:[#allocation4 + $0x7cc] ss:$16 sps:$4 sm:$0xff]  }
 0x1b9   :  { %2358 = vmatprep.subr.bf16.mxu0 %v3651_v18  ;;  %2522 = vmatprep.subr.bf16.mxu1 %v3654_v19  ;;  %v3727_v18 = vld [vmem:[#allocation4 + $0x7c0] ss:$16 sps:$4 sm:$0xff]   ;;  %v3730_v19 = vld [vmem:[#allocation4 + $0x7c8] ss:$16 sps:$4 sm:$0xff]  }
 0x1ba   :  { %2388 = vmatprep.mubr.bf16.mxu0 %v674_v13  ;;  %2552 = vmatprep.mubr.bf16.mxu1 %v674_v13  ;;  %v653_v13 = vadd.f32 %v3965_v6, %v162_v15  ;;  %v3743_v6 = vld [vmem:[#allocation6 + $0x48] sm:$0xff]  }
 0x1bc   :  { %2359 = vmatpush1.bf16.msra.mxu0 %v3649_v20  ;;  %2523 = vmatpush1.bf16.msra.mxu1 %v3652_v21  ;;  %v3735_v20 = vld [vmem:[#allocation4 + $0x7e4] ss:$16 sps:$4 sm:$0xff]   ;;  %v3738_v21 = vld [vmem:[#allocation4 + $0x7ec] ss:$16 sps:$4 sm:$0xff]  }
 0x1bd   :  { %2360 = vmatprep.subr.bf16.mxu0 %v3657_v22  ;;  %2524 = vmatprep.subr.bf16.mxu1 %v3660_v23  ;;  %v3733_v22 = vld [vmem:[#allocation4 + $0x7e0] ss:$16 sps:$4 sm:$0xff]   ;;  %v3736_v23 = vld [vmem:[#allocation4 + $0x7e8] ss:$16 sps:$4 sm:$0xff]  }
 0x1c0   :  { %2361 = vmatpush1.bf16.msra.mxu0 %v3655_v2  ;;  %2525 = vmatpush1.bf16.msra.mxu1 %v3658_v24  ;;  %v665_v2 = vmax.f32 %v653_v13, 0.0  ;;  %v3740_v24 = vld [vmem:[#allocation6 + $0xc0] sm:$0xff]  }
 0x1c1   :  { %2362 = vmatprep.subr.bf16.mxu0 %v3663_v26  ;;  %2526 = vmatprep.subr.bf16.mxu1 %v3666_v27  ;;  %v3741_v26 = vld [vmem:[#allocation6] sm:$0xff]  }
 0x1c2   :  { %v3742_v27 = vld [vmem:[#allocation6 + $0x80] sm:$0xff]  }
 0x1c4   :  { %2363 = vmatpush1.bf16.msra.mxu0 %v3661_v28  ;;  %2527 = vmatpush1.bf16.msra.mxu1 %v3664_v30  ;;  %v673_v28 = vpack.c.bf16 %v665_v2, %v665_v2  ;;  %v3744_v30 = vld [vmem:[#allocation6 + $0xc8] sm:$0xff]  }
 0x1c5   :  { %2364 = vmatprep.subr.bf16.mxu0 %v3669_v31  ;;  %2528 = vmatprep.subr.bf16.mxu1 %v3672_v32  ;;  %v3745_v31 = vld [vmem:[#allocation6 + $0x8] sm:$0xff]  }
 0x1c6   :  { %v3746_v32 = vld [vmem:[#allocation6 + $0x88] sm:$0xff]  }
 0x1c8   :  { %2365 = vmatpush1.bf16.msra.mxu0 %v3667_v33  ;;  %2529 = vmatpush1.bf16.msra.mxu1 %v3670_v34  ;;  %v3747_v33 = vld [vmem:[#allocation6 + $0x50] sm:$0xff]  }
 0x1c9   :  { %2366 = vmatprep.subr.bf16.mxu0 %v3675_v35  ;;  %2530 = vmatprep.subr.bf16.mxu1 %v3678_v36  ;;  %v3748_v34 = vld [vmem:[#allocation6 + $0xd0] sm:$0xff]  }
 0x1ca   :  { %v3749_v35 = vld [vmem:[#allocation6 + $0x10] sm:$0xff]  }
 0x1cb   :  { %v3750_v36 = vld [vmem:[#allocation6 + $0x90] sm:$0xff]  }
 0x1cc   :  { %2367 = vmatpush1.bf16.msra.mxu0 %v3673_v37  ;;  %2531 = vmatpush1.bf16.msra.mxu1 %v3676_v38  ;;  %v3751_v37 = vld [vmem:[#allocation6 + $0x58] sm:$0xff]  }
 0x1cd   :  { %2368 = vmatprep.subr.bf16.mxu0 %v3681_v39  ;;  %2532 = vmatprep.subr.bf16.mxu1 %v3684_v40  ;;  %v3752_v38 = vld [vmem:[#allocation6 + $0xd8] sm:$0xff]  }
 0x1ce   :  { %v3753_v39 = vld [vmem:[#allocation6 + $0x18] sm:$0xff]  }
 0x1cf   :  { %v3754_v40 = vld [vmem:[#allocation6 + $0x98] sm:$0xff]  }
 0x1d0   :  { %2369 = vmatpush1.bf16.msra.mxu0 %v3679_v41  ;;  %2533 = vmatpush1.bf16.msra.mxu1 %v3682_v0  ;;  %v3755_v41 = vld [vmem:[#allocation6 + $0x60] sm:$0xff]  }
 0x1d1   :  { %2370 = vmatprep.subr.bf16.mxu0 %v3687_v42  ;;  %2534 = vmatprep.subr.bf16.mxu1 %v3690_v43  ;;  %v3756_v0 = vld [vmem:[#allocation6 + $0xe0] sm:$0xff]  }
 0x1d2   :  { %v3757_v42 = vld [vmem:[#allocation6 + $0x20] sm:$0xff]  }
 0x1d3   :  { %v3758_v43 = vld [vmem:[#allocation6 + $0xa0] sm:$0xff]  }
 0x1d4   :  { %2371 = vmatpush1.bf16.msra.mxu0 %v3685_v44  ;;  %2535 = vmatpush1.bf16.msra.mxu1 %v3688_v45  ;;  %v3759_v44 = vld [vmem:[#allocation6 + $0x68] sm:$0xff]  }
 0x1d5   :  { %2372 = vmatprep.subr.bf16.mxu0 %v3693_v46  ;;  %2536 = vmatprep.subr.bf16.mxu1 %v3696_v47  ;;  %v3760_v45 = vld [vmem:[#allocation6 + $0xe8] sm:$0xff]  }
 0x1d6   :  { %v3761_v46 = vld [vmem:[#allocation6 + $0x28] sm:$0xff]  }
 0x1d7   :  { %v3762_v47 = vld [vmem:[#allocation6 + $0xa8] sm:$0xff]  }
 0x1d8   :  { %2373 = vmatpush1.bf16.msra.mxu0 %v3691_v48  ;;  %2537 = vmatpush1.bf16.msra.mxu1 %v3694_v49  ;;  %v3763_v48 = vld [vmem:[#allocation6 + $0x70] sm:$0xff]  }
 0x1d9   :  { %2374 = vmatprep.subr.bf16.mxu0 %v3699_v50  ;;  %2538 = vmatprep.subr.bf16.mxu1 %v3702_v25  ;;  %v3764_v49 = vld [vmem:[#allocation6 + $0xf0] sm:$0xff]  }
 0x1da   :  { %v3765_v50 = vld [vmem:[#allocation6 + $0x30] sm:$0xff]  }
 0x1db   :  { %v3766_v25 = vld [vmem:[#allocation6 + $0xb0] sm:$0xff]  }
 0x1dc   :  { %2375 = vmatpush1.bf16.msra.mxu0 %v3697_v51  ;;  %2539 = vmatpush1.bf16.msra.mxu1 %v3700_v52  ;;  %v3767_v51 = vld [vmem:[#allocation6 + $0x78] sm:$0xff]  }
 0x1dd   :  { %2376 = vmatprep.subr.bf16.mxu0 %v3705_v53  ;;  %2540 = vmatprep.subr.bf16.mxu1 %v3708_v54  ;;  %v3768_v52 = vld [vmem:[#allocation6 + $0xf8] sm:$0xff]  }
 0x1de   :  { %v3769_v53 = vld [vmem:[#allocation6 + $0x38] sm:$0xff]  }
 0x1df   :  { %v3770_v54 = vld [vmem:[#allocation6 + $0xb8] sm:$0xff]  }
 0x1e0   :  { %2377 = vmatpush1.bf16.msra.mxu0 %v3703_v55  ;;  %2541 = vmatpush1.bf16.msra.mxu1 %v3706_v56  ;;  %v931_v55 = vld [vmem:[%s4007_s4] sm:$0xf] }
 0x1e1   :  { %2378 = vmatprep.subr.bf16.mxu0 %v3711_v57  ;;  %2542 = vmatprep.subr.bf16.mxu1 %v3714_v59  ;;  %v936_v56 = vrot.slane %v931_v55, %v137_v8  ;;  %v944_v57 = vrot.slane %v931_v55, %v145_v29  ;;  %v940_v59 = vrot.slane %v931_v55, %v141_v10 }
 0x1e4   :  { %2379 = vmatpush1.bf16.msra.mxu0 %v3709_v60  ;;  %2543 = vmatpush1.bf16.msra.mxu1 %v3712_v61  ;;  %v948_v60 = vrot.slane %v931_v55, %v149_v14 }
 0x1e5   :  { %2380 = vmatprep.subr.bf16.mxu0 %v3717_v62  ;;  %2544 = vmatprep.subr.bf16.mxu1 %v3720_v63 }
 0x1e8   :  { %2381 = vmatpush1.bf16.msra.mxu0 %v3715_v1  ;;  %2545 = vmatpush1.bf16.msra.mxu1 %v3718_v3 }
 0x1e9   :  { %2382 = vmatprep.subr.bf16.mxu0 %v3723_v5  ;;  %2546 = vmatprep.subr.bf16.mxu1 %v3726_v11 }
 0x1ec   :  { %2383 = vmatpush1.bf16.msra.mxu0 %v3721_v12  ;;  %2547 = vmatpush1.bf16.msra.mxu1 %v3724_v58 }
 0x1ed   :  { %2384 = vmatprep.subr.bf16.mxu0 %v3729_v16  ;;  %2548 = vmatprep.subr.bf16.mxu1 %v3732_v17 }
 0x1f0   :  { %2385 = vmatpush1.bf16.msra.mxu0 %v3727_v18  ;;  %2549 = vmatpush1.bf16.msra.mxu1 %v3730_v19 }
 0x1f1   :  { %2386 = vmatprep.subr.bf16.mxu0 %v3735_v20  ;;  %2550 = vmatprep.subr.bf16.mxu1 %v3738_v21  ;;  %v3240_v21 = vld [vmem:[%s4009_s6] ss:$0 sm:$0xff] }
 0x1f4   :  { %2387 = vmatpush1.bf16.msra.mxu0 %v3733_v22  ;;  %2551 = vmatpush1.bf16.msra.mxu1 %v3736_v23 }
 0x1f5   :  { %3273 = vmatprep.subr.bf16.mxu0 %v3739_v9  ;;  %3295 = vmatprep.subr.bf16.mxu1 %v3740_v24 }
 0x1f7   :  { %2389 = vmatmul.mubr.bf16.vlgmr.msra.gmra.mrb[8].mxu0 %v673_v28  ;;  %2553 = vmatmul.mubr.bf16.vlgmr.msra.gmra.mrb[8].mxu1 %v673_v28 }
 0x1f8   :  { %3274 = vmatpush3.bf16.msra.mxu0 %v3741_v26  ;;  %3296 = vmatpush3.bf16.msra.mxu1 %v3742_v27 }
 0x1f9   :  { %3275 = vmatprep.subr.bf16.mxu0 %v3743_v6  ;;  %3297 = vmatprep.subr.bf16.mxu1 %v3744_v30 }
 0x1fc   :  { %3276 = vmatpush3.bf16.msra.mxu0 %v3745_v31  ;;  %3298 = vmatpush3.bf16.msra.mxu1 %v3746_v32 }
 0x1fd   :  { %3277 = vmatprep.subr.bf16.mxu0 %v3747_v33  ;;  %3299 = vmatprep.subr.bf16.mxu1 %v3748_v34 }
 0x200   :  { %3278 = vmatpush3.bf16.msra.mxu0 %v3749_v35  ;;  %3300 = vmatpush3.bf16.msra.mxu1 %v3750_v36 }
 0x201   :  { %3279 = vmatprep.subr.bf16.mxu0 %v3751_v37  ;;  %3301 = vmatprep.subr.bf16.mxu1 %v3752_v38 }
 0x204   :  { %3280 = vmatpush3.bf16.msra.mxu0 %v3753_v39  ;;  %3302 = vmatpush3.bf16.msra.mxu1 %v3754_v40 }
 0x205   :  { %3281 = vmatprep.subr.bf16.mxu0 %v3755_v41  ;;  %3303 = vmatprep.subr.bf16.mxu1 %v3756_v0 }
 0x208   :  { %3282 = vmatpush3.bf16.msra.mxu0 %v3757_v42  ;;  %3304 = vmatpush3.bf16.msra.mxu1 %v3758_v43 }
 0x209   :  { %3283 = vmatprep.subr.bf16.mxu0 %v3759_v44  ;;  %3305 = vmatprep.subr.bf16.mxu1 %v3760_v45 }
 0x20c   :  { %3284 = vmatpush3.bf16.msra.mxu0 %v3761_v46  ;;  %3306 = vmatpush3.bf16.msra.mxu1 %v3762_v47 }
 0x20d   :  { %3285 = vmatprep.subr.bf16.mxu0 %v3763_v48  ;;  %3307 = vmatprep.subr.bf16.mxu1 %v3764_v49 }
 0x210   :  { %3286 = vmatpush3.bf16.msra.mxu0 %v3765_v50  ;;  %3308 = vmatpush3.bf16.msra.mxu1 %v3766_v25 }
 0x211   :  { %3287 = vmatprep.subr.bf16.mxu0 %v3767_v51  ;;  %3309 = vmatprep.subr.bf16.mxu1 %v3768_v52 }
 0x214   :  { %3288 = vmatpush3.bf16.msra.mxu0 %v3769_v53  ;;  %3310 = vmatpush3.bf16.msra.mxu1 %v3770_v54 }
 0x2ca   :  { %v2390_v61 = vpop.f32.mrb[8].mxu0  ;;  %v2554_v62 = vpop.f32.mrb[8].mxu1 }
 0x2cb   :  { %v3317_v63 = vadd.f32 %v2390_v61, %v936_v56  ;;  %v3319_v1 = vadd.f32 %v2554_v62, %v944_v57  ;;  %v2392_v3 = vpop.f32.mrb[9].mxu0  ;;  %v2556_v4 = vpop.f32.mrb[9].mxu1 }
 0x2cc   :  { %v3318_v5 = vadd.f32 %v2392_v3, %v940_v59  ;;  %v3320_v11 = vadd.f32 %v2556_v4, %v948_v60  ;;  %v2394_v12 = vpop.f32.mrb[10].mxu0  ;;  %v2558_v58 = vpop.f32.mrb[10].mxu1 }
 0x2cd   :  { %v2561_v8 = vmax.f32 %v3317_v63, 0.0  ;;  %v2563_v15 = vmax.f32 %v3319_v1, 0.0  ;;  %v2395_v16 = vpop.f32.mrb[11].mxu0  ;;  %v2559_v29 = vpop.f32.mrb[11].mxu1 }
 0x2ce   :  { %v2562_v17 = vmax.f32 %v3318_v5, 0.0  ;;  %v2564_v18 = vmax.f32 %v3320_v11, 0.0 }
 0x2cf   :  { %v2565_v7 = vpack.c.bf16 %v2561_v8, %v2561_v8  ;;  %v2567_v14 = vpack.c.bf16 %v2563_v15, %v2563_v15 }
 0x2d0   :  { %v2566_v10 = vpack.c.bf16 %v2562_v17, %v2562_v17  ;;  %v2568_v19 = vpack.c.bf16 %v2564_v18, %v2564_v18 }
 0x2d2   :  { %2864 = vmatprep.mubr.bf16.mxu0 %v2566_v10  ;;  %2904 = vmatprep.mubr.bf16.mxu1 %v2568_v19 }
 0x2d3   :  { %2865 = vmatmul.mubr.bf16.vlgmr.msra.gmra.mrb[12].mxu0 %v2565_v7  ;;  %2905 = vmatmul.mubr.bf16.vlgmr.msra.gmra.mrb[12].mxu1 %v2567_v14 }
 0x3a6   :  { %v3289_v13 = vpop.f32.mrb[12].mxu0  ;;  %v3311_v20 = vpop.f32.mrb[12].mxu1 }
 0x3a7   :  { %v3290_v22 = vpop.f32.mrb[13].mxu0  ;;  %v3312_v23 = vpop.f32.mrb[13].mxu1 }
 0x3a8   :  { %v3291_v2 = vadd.f32 %v3290_v22, %v3289_v13  ;;  %v3313_v9 = vadd.f32 %v3312_v23, %v3311_v20  ;;  %v3292_v24 = vpop.f32.mrb[14].mxu0  ;;  %v3314_v26 = vpop.f32.mrb[14].mxu1 }
 0x3a9   :  { %v3293_v27 = vpop.f32.mrb[15].mxu0  ;;  %v3315_v28 = vpop.f32.mrb[15].mxu1 }
 0x3aa   :  { %v2867_v6 = vadd.f32 %v3291_v2, %v3240_v21 }
 0x3ac   :  { %v2907_v30 = vadd.f32 %v3313_v9, %v2867_v6 }
 0x3ae   :  { %v2912_v31 = vmax.f32 %v2907_v30, 0.0 }
 0x3b0   :  { %2913 = vst [vmem:[%s4010_s7] sm:$0xff] %v2912_v31 }
 0x3b1   :  { %2918 = vsyncpa [#allocation3], 1 }
 0x3b2   :  { %2919 = vsyncpa [#allocation5], 1 }

</bundles_post_ra>
